<compile_context>
chip_gen: v6e
topology: v6e:2x2x1
jax: 0.10.0
libtpu: 0.0.40
codegen_flags: <defaults>
</compile_context>

<pallas_src>
import functools

import jax
import jax.numpy as jnp
from jax.experimental import pallas as pl
from jax.experimental.pallas import tpu as pltpu


def _round_up(x, m):
    return (x + m - 1) // m * m


def _tpu_vmem_capacity_bytes():
    """Physical VMEM of the attached TPU; conservative default if unknown."""
    try:
        info = pltpu.get_tpu_info()
        cap = int(getattr(info, "vmem_capacity_bytes", 0))
        if cap > 0:
            return cap
    except Exception:
        pass
    return 64 * 1024 * 1024  # v7x per-TensorCore VMEM (smallest of the targets)


def _pick_time_chunk(seq_len, bs, hp, mm_bytes, budget_bytes):
    """Largest time chunk whose VMEM footprint fits the per-generation budget."""
    fixed = hp * 4 * hp * mm_bytes + 2 * bs * hp * 4          # W_hh copy + h/c scratch
    per_t = 2 * bs * 4 * hp * mm_bytes + 2 * bs * hp * 4      # dbl-buffered xproj + out
    avail = max(budget_bytes - fixed, per_t)
    t = int(min(seq_len, avail // per_t, 256))
    t = max(t, 1)
    if t > 8:
        t = (t // 8) * 8            # keep the fori_loop unroll factor even
    return seq_len if t >= seq_len else t


def _lstm_recurrence_kernel(xproj_ref, whh_hbm, out_ref, h_sc, c_sc, w_sc, *,
                            unroll):
    """Serial LSTM recurrence for one (batch-shard, time-chunk) grid step.

    xproj_ref : (T, Bs, 4*Hp)  precomputed x @ W_ih^T + bias, time-major
    whh_hbm   : (Hp, 4*Hp)     recurrent weights, left in HBM (pl.ANY)
    out_ref   : (T, Bs, Hp)    lane-dense hidden-state outputs for this chunk
    h_sc,c_sc : (Bs, Hp) f32   persistent state across the time-chunk grid axis
    w_sc      : (Hp, 4*Hp)     single-buffered VMEM copy of the weights
    """
    chunk = pl.program_id(1)

    @pl.when(chunk == 0)
    def _():
        pltpu.sync_copy(whh_hbm, w_sc)        # copy the constant weight once
        h_sc[...] = jnp.zeros_like(h_sc)
        c_sc[...] = jnp.zeros_like(c_sc)

    T = xproj_ref.shape[0]
    Hp = h_sc.shape[1]
    whh = w_sc[...]                           # hoisted; reused every timestep

    def step(t, carry):
        # One contiguous (Bs, 4*Hp) slab load + MXU matmul; f32 accumulation.
        gates = xproj_ref[t].astype(jnp.float32) + jnp.dot(
            h_sc[...].astype(whh.dtype), whh,
            preferred_element_type=jnp.float32)

        # Lane-tile aligned gate slices (each gate owns its own 128-lane block).
        i_g = jax.nn.sigmoid(gates[:, 0 * Hp:1 * Hp])
        f_g = jax.nn.sigmoid(gates[:, 1 * Hp:2 * Hp])
        g_g = jnp.tanh(gates[:, 2 * Hp:3 * Hp])
        o_g = jax.nn.sigmoid(gates[:, 3 * Hp:4 * Hp])

        c_new = f_g * c_sc[...] + i_g * g_g
        h_new = o_g * jnp.tanh(c_new)

        c_sc[...] = c_new
        h_sc[...] = h_new
        out_ref[t] = h_new                    # full-Hp, unmasked lane-dense store
        return carry

    jax.lax.fori_loop(0, T, step, None, unroll=unroll)


def lstm_pallas(x, w_ih, w_hh, b_ih, b_hh, *, reverse=False,
                matmul_dtype=jnp.bfloat16, batch_shards=1,
                min_rows_per_shard=256):
    """x: (batch, seq, inp_dim). Returns (batch, seq, hidden) float32."""
    B, S, I = x.shape
    H = w_ih.shape[0] // 4
    Hp = _round_up(H, 128)
    f32 = jnp.float32
    mm_dtype = jnp.dtype(matmul_dtype)
    mm_bytes = mm_dtype.itemsize

    if reverse:
        x = jnp.flip(x, axis=1)
    x = x.astype(f32)

    # --- Gate-padded weight layouts: gate k occupies lanes [k*Hp, k*Hp + H). --
    w_ih_g = jnp.transpose(w_ih.reshape(4, H, I).astype(f32), (2, 0, 1))   # (I,4,H)
    w_hh_g = jnp.transpose(w_hh.reshape(4, H, H).astype(f32), (2, 0, 1))   # (H,4,H)
    b_g = (b_ih + b_hh).astype(f32).reshape(4, H)

    w_ih_pad = jnp.zeros((I, 4, Hp), f32).at[:, :, :H].set(w_ih_g).reshape(I, 4 * Hp)
    w_hh_pad = jnp.zeros((Hp, 4, Hp), f32).at[:H, :, :H].set(w_hh_g).reshape(Hp, 4 * Hp)
    b_pad = jnp.zeros((4, Hp), f32).at[:, :H].set(b_g).reshape(4 * Hp)

    # --- Hoisted input projection, emitted TIME-MAJOR: (S, B, 4*Hp). ---------
    xproj = jnp.einsum('bsi,ig->sbg', x, w_ih_pad) + b_pad

    # --- Batch sharding only when each shard keeps the MXU M-dim filled. -----
    if batch_shards > 1 and (B % batch_shards != 0
                             or B // batch_shards < min_rows_per_shard):
        batch_shards = 1
    Bs = B // batch_shards

    # --- VMEM-budget-aware time chunking; zero-pad the time tail. ------------
    cap = _tpu_vmem_capacity_bytes()
    T = _pick_time_chunk(S, Bs, Hp, mm_bytes, int(cap * 0.7))
    S_pad = pl.cdiv(S, T) * T
    if S_pad != S:
        xproj = jnp.pad(xproj, ((0, S_pad - S), (0, 0), (0, 0)))
    n_chunks = S_pad // T

    xproj = xproj.astype(mm_dtype)            # halve HBM->VMEM traffic (bf16 default)
    whh_mm = w_hh_pad.astype(mm_dtype)

    footprint = (2 * T * Bs * 4 * Hp * mm_bytes   # xproj blocks (double-buffered)
                 + 2 * T * Bs * Hp * 4            # out blocks (double-buffered, f32)
                 + Hp * 4 * Hp * mm_bytes         # single-buffered W_hh scratch
                 + 2 * Bs * Hp * 4)               # h / c scratch
    vmem_limit = int(min(cap * 0.9, max(2 * footprint, 32 * 1024 * 1024)))

    unroll = T if T <= 8 else 8

    # TODO(synk): if the next-chunk xproj DMA is still exposed at small Bs,
    #             raise in_specs[0] to pipeline_mode=pl.Buffered(3) where the
    #             VMEM budget allows.
    out = pl.pallas_call(
        functools.partial(_lstm_recurrence_kernel, unroll=unroll),
        out_shape=jax.ShapeDtypeStruct((S_pad, B, Hp), f32),
        grid_spec=pltpu.PrefetchScalarGridSpec(
            num_scalar_prefetch=0,
            grid=(batch_shards, n_chunks),
            in_specs=[
                pl.BlockSpec((T, Bs, 4 * Hp), lambda b, n: (n, b, 0)),
                pl.BlockSpec(memory_space=pl.ANY),     # W_hh stays in HBM
            ],
            out_specs=pl.BlockSpec((T, Bs, Hp), lambda b, n: (n, b, 0)),
            scratch_shapes=[
                pltpu.VMEM((Bs, Hp), f32),             # h_t
                pltpu.VMEM((Bs, Hp), f32),             # c_t
                pltpu.VMEM((Hp, 4 * Hp), mm_dtype),    # single-buffered W_hh copy
            ],
        ),
        compiler_params=pltpu.CompilerParams(
            dimension_semantics=("parallel", "arbitrary"),
            vmem_limit_bytes=vmem_limit),
    )(xproj, whh_mm)

    # Back to (B, S, H): drop the time pad and lane pad outside the kernel.
    out = jnp.transpose(out[:S, :, :H], (1, 0, 2))
    if reverse:
        out = jnp.flip(out, axis=1)
    return out


def lstm_reference(x, w_ih, w_hh, b_ih, b_hh):
    """Pure-JAX reference matching torch.nn.LSTM (batch_first, 1 layer)."""
    B, S, I = x.shape
    H = w_hh.shape[1]

    def step(carry, x_t):
        h, c = carry
        gates = x_t @ w_ih.T + b_ih + h @ w_hh.T + b_hh
        i_g, f_g, g_g, o_g = jnp.split(gates, 4, axis=-1)
        i_g = jax.nn.sigmoid(i_g)
        f_g = jax.nn.sigmoid(f_g)
        g_g = jnp.tanh(g_g)
        o_g = jax.nn.sigmoid(o_g)
        c_new = f_g * c + i_g * g_g
        h_new = o_g * jnp.tanh(c_new)
        return (h_new, c_new), h_new

    h0 = jnp.zeros((B, H), jnp.float32)
    c0 = jnp.zeros((B, H), jnp.float32)
    _, hs = jax.lax.scan(step, (h0, c0), jnp.transpose(x, (1, 0, 2)))
    return jnp.transpose(hs, (1, 0, 2))


if __name__ == "__main__":
    # Small shapes implied by the module: batch=2, seq=8, inp_dim=16, hidden=32.
    B, S, I, H = 2, 8, 16, 32

    key = jax.random.PRNGKey(0)
    kx, k1, k2, k3, k4 = jax.random.split(key, 5)

    # torch.nn.LSTM parameter shapes: weight_ih_l0 (4H, I), weight_hh_l0 (4H, H).
    scale = 1.0 / jnp.sqrt(H)
    w_ih = jax.random.uniform(k1, (4 * H, I), jnp.float32, -scale, scale)
    w_hh = jax.random.uniform(k2, (4 * H, H), jnp.float32, -scale, scale)
    b_ih = jax.random.uniform(k3, (4 * H,), jnp.float32, -scale, scale)
    b_hh = jax.random.uniform(k4, (4 * H,), jnp.float32, -scale, scale)

    x = jax.random.normal(kx, (B, S, I), jnp.float32)

    ref = lstm_reference(x, w_ih, w_hh, b_ih, b_hh)

    # f32 MXU path: exact-tolerance check against the reference.
    out_f32 = lstm_pallas(x, w_ih, w_hh, b_ih, b_hh, matmul_dtype=jnp.float32)
    out_f32 = jax.block_until_ready(out_f32)
    assert out_f32.shape == (B, S, H), out_f32.shape
    assert jnp.allclose(out_f32, ref, atol=1e-4, rtol=1e-4), \
        float(jnp.max(jnp.abs(out_f32 - ref)))

    # Default bf16 MXU path (f32 state / gate math): looser tolerance.
    out_bf16 = lstm_pallas(x, w_ih, w_hh, b_ih, b_hh)
    out_bf16 = jax.block_until_ready(out_bf16)
    assert out_bf16.shape == (B, S, H), out_bf16.shape
    assert jnp.allclose(out_bf16, ref, atol=5e-2, rtol=5e-2), \
        float(jnp.max(jnp.abs(out_bf16 - ref)))

    # reverse=True path of the module (flip in, run, flip out).
    ref_rev = jnp.flip(lstm_reference(jnp.flip(x, axis=1), w_ih, w_hh, b_ih, b_hh),
                       axis=1)
    out_rev = lstm_pallas(x, w_ih, w_hh, b_ih, b_hh, reverse=True,
                          matmul_dtype=jnp.float32)
    out_rev = jax.block_until_ready(out_rev)
    assert jnp.allclose(out_rev, ref_rev, atol=1e-4, rtol=1e-4), \
        float(jnp.max(jnp.abs(out_rev - ref_rev)))

    print("KERNEL_OK")
</pallas_src>

<mosaic_0001>
module attributes {stable_mosaic.version = 11 : i64} {
  func.func @_lstm_recurrence_kernel(%arg0: i32, %arg1: i32, %arg2: memref<8x2x512xf32, #tpu.memory_space<vmem>>, %arg3: memref<128x512xf32, #tpu.memory_space<any>>, %arg4: memref<8x2x128xf32, #tpu.memory_space<vmem>>, %arg5: memref<2x128xf32, #tpu.memory_space<vmem>>, %arg6: memref<2x128xf32, #tpu.memory_space<vmem>>, %arg7: memref<128x512xf32, #tpu.memory_space<vmem>>) attributes {dimension_semantics = [#tpu.dimension_semantics<parallel>, #tpu.dimension_semantics<arbitrary>], iteration_bounds = array<i64: 1, 1>, scalar_prefetch = 0 : i64, scratch_operands = 3 : i64, tpu.core_type = #tpu.core_type<tc>, window_params = [{transform_indices = @transform_0, window_bounds = array<i64: 8, 2, 512>}, {}, {transform_indices = @transform_2, window_bounds = array<i64: 8, 2, 128>}]} {
    %c0_i32 = arith.constant 0 : i32
    %0 = arith.cmpi eq, %arg1, %c0_i32 : i32
    %1 = arith.extui %0 : i1 to i32
    %c0_i32_0 = arith.constant 0 : i32
    %2 = arith.cmpi ne, %1, %c0_i32_0 : i32
    scf.if %2 {
      "tpu.region"() ({
        %312 = tpu.sem_alloc : memref<!tpu.dma_semaphore, #tpu.memory_space<semaphore_mem>>
        tpu.enqueue_dma source(%arg3 : memref<128x512xf32, #tpu.memory_space<any>>) target(%arg7 : memref<128x512xf32, #tpu.memory_space<vmem>>) target_semaphore(%312 : memref<!tpu.dma_semaphore, #tpu.memory_space<semaphore_mem>>)
        tpu.wait_dma2 semaphore(%312 : memref<!tpu.dma_semaphore, #tpu.memory_space<semaphore_mem>>) src(%arg3 : memref<128x512xf32, #tpu.memory_space<any>>) dst(%arg7 : memref<128x512xf32, #tpu.memory_space<vmem>>)
        tpu.yield
      }) : () -> ()
      %cst_130 = arith.constant 0.000000e+00 : f32
      %308 = vector.broadcast %cst_130 : f32 to vector<2x128xf32>
      %c0_131 = arith.constant 0 : index
      %c0_132 = arith.constant 0 : index
      %309 = vector.load %arg5[%c0_131, %c0_132] : memref<2x128xf32, #tpu.memory_space<vmem>>, vector<2x128xf32>
      tpu.vector_store %arg5[%c0_131, %c0_132], %308 {strides = array<i32>} : memref<2x128xf32, #tpu.memory_space<vmem>>, vector<2x128xf32>,
      %cst_133 = arith.constant 0.000000e+00 : f32
      %310 = vector.broadcast %cst_133 : f32 to vector<2x128xf32>
      %c0_134 = arith.constant 0 : index
      %c0_135 = arith.constant 0 : index
      %311 = vector.load %arg6[%c0_134, %c0_135] : memref<2x128xf32, #tpu.memory_space<vmem>>, vector<2x128xf32>
      tpu.vector_store %arg6[%c0_134, %c0_135], %310 {strides = array<i32>} : memref<2x128xf32, #tpu.memory_space<vmem>>, vector<2x128xf32>,
    } else {
    }
    %c0 = arith.constant 0 : index
    %c0_1 = arith.constant 0 : index
    %3 = vector.load %arg7[%c0, %c0_1] : memref<128x512xf32, #tpu.memory_space<vmem>>, vector<128x512xf32>
    %c0_i32_2 = arith.constant 0 : i32
    %4 = arith.index_cast %c0_i32_2 : i32 to index
    %c0_3 = arith.constant 0 : index
    %c0_4 = arith.constant 0 : index
    %5 = vector.load %arg2[%4, %c0_3, %c0_4] : memref<8x2x512xf32, #tpu.memory_space<vmem>>, vector<1x2x512xf32>
    %6 = vector.shape_cast %5 : vector<1x2x512xf32> to vector<2x512xf32>
    %c0_5 = arith.constant 0 : index
    %c0_6 = arith.constant 0 : index
    %7 = vector.load %arg5[%c0_5, %c0_6] : memref<2x128xf32, #tpu.memory_space<vmem>>, vector<2x128xf32>
    %cst = arith.constant dense<0.000000e+00> : vector<2x512xf32>
    %8 = tpu.matmul %7, %3, %cst {dimension_numbers = #tpu.dot_dimension_numbers<[1], [0], [0], [1], [0, 0, 1, 1], [], []>} : vector<2x128xf32>, vector<128x512xf32>, vector<2x512xf32> -> vector<2x512xf32>
    %9 = arith.addf %6, %8 : vector<2x512xf32>
    %10 = vector.extract_strided_slice %9 {offsets = [0, 0], sizes = [2, 128], strides = [1, 1]} : vector<2x512xf32> to vector<2x128xf32>
    %11 = arith.negf %10 : vector<2x128xf32>
    %12 = math.exp %11 : vector<2x128xf32>
    %cst_7 = arith.constant 1.000000e+00 : f32
    %13 = vector.broadcast %cst_7 : f32 to vector<2x128xf32>
    %14 = arith.addf %13, %12 : vector<2x128xf32>
    %15 = arith.divf %13, %14 : vector<2x128xf32>
    %16 = vector.extract_strided_slice %9 {offsets = [0, 128], sizes = [2, 128], strides = [1, 1]} : vector<2x512xf32> to vector<2x128xf32>
    %17 = arith.negf %16 : vector<2x128xf32>
    %18 = math.exp %17 : vector<2x128xf32>
    %cst_8 = arith.constant 1.000000e+00 : f32
    %19 = vector.broadcast %cst_8 : f32 to vector<2x128xf32>
    %20 = arith.addf %19, %18 : vector<2x128xf32>
    %21 = arith.divf %19, %20 : vector<2x128xf32>
    %22 = vector.extract_strided_slice %9 {offsets = [0, 256], sizes = [2, 128], strides = [1, 1]} : vector<2x512xf32> to vector<2x128xf32>
    %23 = math.tanh %22 : vector<2x128xf32>
    %24 = vector.extract_strided_slice %9 {offsets = [0, 384], sizes = [2, 128], strides = [1, 1]} : vector<2x512xf32> to vector<2x128xf32>
    %25 = arith.negf %24 : vector<2x128xf32>
    %26 = math.exp %25 : vector<2x128xf32>
    %cst_9 = arith.constant 1.000000e+00 : f32
    %27 = vector.broadcast %cst_9 : f32 to vector<2x128xf32>
    %28 = arith.addf %27, %26 : vector<2x128xf32>
    %29 = arith.divf %27, %28 : vector<2x128xf32>
    %c0_10 = arith.constant 0 : index
    %c0_11 = arith.constant 0 : index
    %30 = vector.load %arg6[%c0_10, %c0_11] : memref<2x128xf32, #tpu.memory_space<vmem>>, vector<2x128xf32>
    %31 = arith.mulf %21, %30 : vector<2x128xf32>
    %32 = arith.mulf %15, %23 : vector<2x128xf32>
    %33 = arith.addf %31, %32 : vector<2x128xf32>
    %34 = math.tanh %33 : vector<2x128xf32>
    %35 = arith.mulf %29, %34 : vector<2x128xf32>
    %c0_12 = arith.constant 0 : index
    %c0_13 = arith.constant 0 : index
    %36 = vector.load %arg6[%c0_12, %c0_13] : memref<2x128xf32, #tpu.memory_space<vmem>>, vector<2x128xf32>
    tpu.vector_store %arg6[%c0_12, %c0_13], %33 {strides = array<i32>} : memref<2x128xf32, #tpu.memory_space<vmem>>, vector<2x128xf32>,
    %c0_14 = arith.constant 0 : index
    %c0_15 = arith.constant 0 : index
    %37 = vector.load %arg5[%c0_14, %c0_15] : memref<2x128xf32, #tpu.memory_space<vmem>>, vector<2x128xf32>
    tpu.vector_store %arg5[%c0_14, %c0_15], %35 {strides = array<i32>} : memref<2x128xf32, #tpu.memory_space<vmem>>, vector<2x128xf32>,
    %38 = arith.index_cast %c0_i32_2 : i32 to index
    %c0_16 = arith.constant 0 : index
    %c0_17 = arith.constant 0 : index
    %39 = vector.load %arg4[%38, %c0_16, %c0_17] : memref<8x2x128xf32, #tpu.memory_space<vmem>>, vector<1x2x128xf32>
    %40 = vector.shape_cast %39 : vector<1x2x128xf32> to vector<2x128xf32>
    %41 = vector.shape_cast %35 : vector<2x128xf32> to vector<1x2x128xf32>
    tpu.vector_store %arg4[%38, %c0_16, %c0_17], %41 {strides = array<i32>} : memref<8x2x128xf32, #tpu.memory_space<vmem>>, vector<1x2x128xf32>,
    %c1_i32 = arith.constant 1 : i32
    %42 = arith.index_cast %c1_i32 : i32 to index
    %c0_18 = arith.constant 0 : index
    %c0_19 = arith.constant 0 : index
    %43 = vector.load %arg2[%42, %c0_18, %c0_19] : memref<8x2x512xf32, #tpu.memory_space<vmem>>, vector<1x2x512xf32>
    %44 = vector.shape_cast %43 : vector<1x2x512xf32> to vector<2x512xf32>
    %c0_20 = arith.constant 0 : index
    %c0_21 = arith.constant 0 : index
    %45 = vector.load %arg5[%c0_20, %c0_21] : memref<2x128xf32, #tpu.memory_space<vmem>>, vector<2x128xf32>
    %cst_22 = arith.constant dense<0.000000e+00> : vector<2x512xf32>
    %46 = tpu.matmul %45, %3, %cst_22 {dimension_numbers = #tpu.dot_dimension_numbers<[1], [0], [0], [1], [0, 0, 1, 1], [], []>} : vector<2x128xf32>, vector<128x512xf32>, vector<2x512xf32> -> vector<2x512xf32>
    %47 = arith.addf %44, %46 : vector<2x512xf32>
    %48 = vector.extract_strided_slice %47 {offsets = [0, 0], sizes = [2, 128], strides = [1, 1]} : vector<2x512xf32> to vector<2x128xf32>
    %49 = arith.negf %48 : vector<2x128xf32>
    %50 = math.exp %49 : vector<2x128xf32>
    %cst_23 = arith.constant 1.000000e+00 : f32
    %51 = vector.broadcast %cst_23 : f32 to vector<2x128xf32>
    %52 = arith.addf %51, %50 : vector<2x128xf32>
    %53 = arith.divf %51, %52 : vector<2x128xf32>
    %54 = vector.extract_strided_slice %47 {offsets = [0, 128], sizes = [2, 128], strides = [1, 1]} : vector<2x512xf32> to vector<2x128xf32>
    %55 = arith.negf %54 : vector<2x128xf32>
    %56 = math.exp %55 : vector<2x128xf32>
    %cst_24 = arith.constant 1.000000e+00 : f32
    %57 = vector.broadcast %cst_24 : f32 to vector<2x128xf32>
    %58 = arith.addf %57, %56 : vector<2x128xf32>
    %59 = arith.divf %57, %58 : vector<2x128xf32>
    %60 = vector.extract_strided_slice %47 {offsets = [0, 256], sizes = [2, 128], strides = [1, 1]} : vector<2x512xf32> to vector<2x128xf32>
    %61 = math.tanh %60 : vector<2x128xf32>
    %62 = vector.extract_strided_slice %47 {offsets = [0, 384], sizes = [2, 128], strides = [1, 1]} : vector<2x512xf32> to vector<2x128xf32>
    %63 = arith.negf %62 : vector<2x128xf32>
    %64 = math.exp %63 : vector<2x128xf32>
    %cst_25 = arith.constant 1.000000e+00 : f32
    %65 = vector.broadcast %cst_25 : f32 to vector<2x128xf32>
    %66 = arith.addf %65, %64 : vector<2x128xf32>
    %67 = arith.divf %65, %66 : vector<2x128xf32>
    %c0_26 = arith.constant 0 : index
    %c0_27 = arith.constant 0 : index
    %68 = vector.load %arg6[%c0_26, %c0_27] : memref<2x128xf32, #tpu.memory_space<vmem>>, vector<2x128xf32>
    %69 = arith.mulf %59, %68 : vector<2x128xf32>
    %70 = arith.mulf %53, %61 : vector<2x128xf32>
    %71 = arith.addf %69, %70 : vector<2x128xf32>
    %72 = math.tanh %71 : vector<2x128xf32>
    %73 = arith.mulf %67, %72 : vector<2x128xf32>
    %c0_28 = arith.constant 0 : index
    %c0_29 = arith.constant 0 : index
    %74 = vector.load %arg6[%c0_28, %c0_29] : memref<2x128xf32, #tpu.memory_space<vmem>>, vector<2x128xf32>
    tpu.vector_store %arg6[%c0_28, %c0_29], %71 {strides = array<i32>} : memref<2x128xf32, #tpu.memory_space<vmem>>, vector<2x128xf32>,
    %c0_30 = arith.constant 0 : index
    %c0_31 = arith.constant 0 : index
    %75 = vector.load %arg5[%c0_30, %c0_31] : memref<2x128xf32, #tpu.memory_space<vmem>>, vector<2x128xf32>
    tpu.vector_store %arg5[%c0_30, %c0_31], %73 {strides = array<i32>} : memref<2x128xf32, #tpu.memory_space<vmem>>, vector<2x128xf32>,
    %76 = arith.index_cast %c1_i32 : i32 to index
    %c0_32 = arith.constant 0 : index
    %c0_33 = arith.constant 0 : index
    %77 = vector.load %arg4[%76, %c0_32, %c0_33] : memref<8x2x128xf32, #tpu.memory_space<vmem>>, vector<1x2x128xf32>
    %78 = vector.shape_cast %77 : vector<1x2x128xf32> to vector<2x128xf32>
    %79 = vector.shape_cast %73 : vector<2x128xf32> to vector<1x2x128xf32>
    tpu.vector_store %arg4[%76, %c0_32, %c0_33], %79 {strides = array<i32>} : memref<8x2x128xf32, #tpu.memory_space<vmem>>, vector<1x2x128xf32>,
    %c2_i32 = arith.constant 2 : i32
    %80 = arith.index_cast %c2_i32 : i32 to index
    %c0_34 = arith.constant 0 : index
    %c0_35 = arith.constant 0 : index
    %81 = vector.load %arg2[%80, %c0_34, %c0_35] : memref<8x2x512xf32, #tpu.memory_space<vmem>>, vector<1x2x512xf32>
    %82 = vector.shape_cast %81 : vector<1x2x512xf32> to vector<2x512xf32>
    %c0_36 = arith.constant 0 : index
    %c0_37 = arith.constant 0 : index
    %83 = vector.load %arg5[%c0_36, %c0_37] : memref<2x128xf32, #tpu.memory_space<vmem>>, vector<2x128xf32>
    %cst_38 = arith.constant dense<0.000000e+00> : vector<2x512xf32>
    %84 = tpu.matmul %83, %3, %cst_38 {dimension_numbers = #tpu.dot_dimension_numbers<[1], [0], [0], [1], [0, 0, 1, 1], [], []>} : vector<2x128xf32>, vector<128x512xf32>, vector<2x512xf32> -> vector<2x512xf32>
    %85 = arith.addf %82, %84 : vector<2x512xf32>
    %86 = vector.extract_strided_slice %85 {offsets = [0, 0], sizes = [2, 128], strides = [1, 1]} : vector<2x512xf32> to vector<2x128xf32>
    %87 = arith.negf %86 : vector<2x128xf32>
    %88 = math.exp %87 : vector<2x128xf32>
    %cst_39 = arith.constant 1.000000e+00 : f32
    %89 = vector.broadcast %cst_39 : f32 to vector<2x128xf32>
    %90 = arith.addf %89, %88 : vector<2x128xf32>
    %91 = arith.divf %89, %90 : vector<2x128xf32>
    %92 = vector.extract_strided_slice %85 {offsets = [0, 128], sizes = [2, 128], strides = [1, 1]} : vector<2x512xf32> to vector<2x128xf32>
    %93 = arith.negf %92 : vector<2x128xf32>
    %94 = math.exp %93 : vector<2x128xf32>
    %cst_40 = arith.constant 1.000000e+00 : f32
    %95 = vector.broadcast %cst_40 : f32 to vector<2x128xf32>
    %96 = arith.addf %95, %94 : vector<2x128xf32>
    %97 = arith.divf %95, %96 : vector<2x128xf32>
    %98 = vector.extract_strided_slice %85 {offsets = [0, 256], sizes = [2, 128], strides = [1, 1]} : vector<2x512xf32> to vector<2x128xf32>
    %99 = math.tanh %98 : vector<2x128xf32>
    %100 = vector.extract_strided_slice %85 {offsets = [0, 384], sizes = [2, 128], strides = [1, 1]} : vector<2x512xf32> to vector<2x128xf32>
    %101 = arith.negf %100 : vector<2x128xf32>
    %102 = math.exp %101 : vector<2x128xf32>
    %cst_41 = arith.constant 1.000000e+00 : f32
    %103 = vector.broadcast %cst_41 : f32 to vector<2x128xf32>
    %104 = arith.addf %103, %102 : vector<2x128xf32>
    %105 = arith.divf %103, %104 : vector<2x128xf32>
    %c0_42 = arith.constant 0 : index
    %c0_43 = arith.constant 0 : index
    %106 = vector.load %arg6[%c0_42, %c0_43] : memref<2x128xf32, #tpu.memory_space<vmem>>, vector<2x128xf32>
    %107 = arith.mulf %97, %106 : vector<2x128xf32>
    %108 = arith.mulf %91, %99 : vector<2x128xf32>
    %109 = arith.addf %107, %108 : vector<2x128xf32>
    %110 = math.tanh %109 : vector<2x128xf32>
    %111 = arith.mulf %105, %110 : vector<2x128xf32>
    %c0_44 = arith.constant 0 : index
    %c0_45 = arith.constant 0 : index
    %112 = vector.load %arg6[%c0_44, %c0_45] : memref<2x128xf32, #tpu.memory_space<vmem>>, vector<2x128xf32>
    tpu.vector_store %arg6[%c0_44, %c0_45], %109 {strides = array<i32>} : memref<2x128xf32, #tpu.memory_space<vmem>>, vector<2x128xf32>,
    %c0_46 = arith.constant 0 : index
    %c0_47 = arith.constant 0 : index
    %113 = vector.load %arg5[%c0_46, %c0_47] : memref<2x128xf32, #tpu.memory_space<vmem>>, vector<2x128xf32>
    tpu.vector_store %arg5[%c0_46, %c0_47], %111 {strides = array<i32>} : memref<2x128xf32, #tpu.memory_space<vmem>>, vector<2x128xf32>,
    %114 = arith.index_cast %c2_i32 : i32 to index
    %c0_48 = arith.constant 0 : index
    %c0_49 = arith.constant 0 : index
    %115 = vector.load %arg4[%114, %c0_48, %c0_49] : memref<8x2x128xf32, #tpu.memory_space<vmem>>, vector<1x2x128xf32>
    %116 = vector.shape_cast %115 : vector<1x2x128xf32> to vector<2x128xf32>
    %117 = vector.shape_cast %111 : vector<2x128xf32> to vector<1x2x128xf32>
    tpu.vector_store %arg4[%114, %c0_48, %c0_49], %117 {strides = array<i32>} : memref<8x2x128xf32, #tpu.memory_space<vmem>>, vector<1x2x128xf32>,
    %c3_i32 = arith.constant 3 : i32
    %118 = arith.index_cast %c3_i32 : i32 to index
    %c0_50 = arith.constant 0 : index
    %c0_51 = arith.constant 0 : index
    %119 = vector.load %arg2[%118, %c0_50, %c0_51] : memref<8x2x512xf32, #tpu.memory_space<vmem>>, vector<1x2x512xf32>
    %120 = vector.shape_cast %119 : vector<1x2x512xf32> to vector<2x512xf32>
    %c0_52 = arith.constant 0 : index
    %c0_53 = arith.constant 0 : index
    %121 = vector.load %arg5[%c0_52, %c0_53] : memref<2x128xf32, #tpu.memory_space<vmem>>, vector<2x128xf32>
    %cst_54 = arith.constant dense<0.000000e+00> : vector<2x512xf32>
    %122 = tpu.matmul %121, %3, %cst_54 {dimension_numbers = #tpu.dot_dimension_numbers<[1], [0], [0], [1], [0, 0, 1, 1], [], []>} : vector<2x128xf32>, vector<128x512xf32>, vector<2x512xf32> -> vector<2x512xf32>
    %123 = arith.addf %120, %122 : vector<2x512xf32>
    %124 = vector.extract_strided_slice %123 {offsets = [0, 0], sizes = [2, 128], strides = [1, 1]} : vector<2x512xf32> to vector<2x128xf32>
    %125 = arith.negf %124 : vector<2x128xf32>
    %126 = math.exp %125 : vector<2x128xf32>
    %cst_55 = arith.constant 1.000000e+00 : f32
    %127 = vector.broadcast %cst_55 : f32 to vector<2x128xf32>
    %128 = arith.addf %127, %126 : vector<2x128xf32>
    %129 = arith.divf %127, %128 : vector<2x128xf32>
    %130 = vector.extract_strided_slice %123 {offsets = [0, 128], sizes = [2, 128], strides = [1, 1]} : vector<2x512xf32> to vector<2x128xf32>
    %131 = arith.negf %130 : vector<2x128xf32>
    %132 = math.exp %131 : vector<2x128xf32>
    %cst_56 = arith.constant 1.000000e+00 : f32
    %133 = vector.broadcast %cst_56 : f32 to vector<2x128xf32>
    %134 = arith.addf %133, %132 : vector<2x128xf32>
    %135 = arith.divf %133, %134 : vector<2x128xf32>
    %136 = vector.extract_strided_slice %123 {offsets = [0, 256], sizes = [2, 128], strides = [1, 1]} : vector<2x512xf32> to vector<2x128xf32>
    %137 = math.tanh %136 : vector<2x128xf32>
    %138 = vector.extract_strided_slice %123 {offsets = [0, 384], sizes = [2, 128], strides = [1, 1]} : vector<2x512xf32> to vector<2x128xf32>
    %139 = arith.negf %138 : vector<2x128xf32>
    %140 = math.exp %139 : vector<2x128xf32>
    %cst_57 = arith.constant 1.000000e+00 : f32
    %141 = vector.broadcast %cst_57 : f32 to vector<2x128xf32>
    %142 = arith.addf %141, %140 : vector<2x128xf32>
    %143 = arith.divf %141, %142 : vector<2x128xf32>
    %c0_58 = arith.constant 0 : index
    %c0_59 = arith.constant 0 : index
    %144 = vector.load %arg6[%c0_58, %c0_59] : memref<2x128xf32, #tpu.memory_space<vmem>>, vector<2x128xf32>
    %145 = arith.mulf %135, %144 : vector<2x128xf32>
    %146 = arith.mulf %129, %137 : vector<2x128xf32>
    %147 = arith.addf %145, %146 : vector<2x128xf32>
    %148 = math.tanh %147 : vector<2x128xf32>
    %149 = arith.mulf %143, %148 : vector<2x128xf32>
    %c0_60 = arith.constant 0 : index
    %c0_61 = arith.constant 0 : index
    %150 = vector.load %arg6[%c0_60, %c0_61] : memref<2x128xf32, #tpu.memory_space<vmem>>, vector<2x128xf32>
    tpu.vector_store %arg6[%c0_60, %c0_61], %147 {strides = array<i32>} : memref<2x128xf32, #tpu.memory_space<vmem>>, vector<2x128xf32>,
    %c0_62 = arith.constant 0 : index
    %c0_63 = arith.constant 0 : index
    %151 = vector.load %arg5[%c0_62, %c0_63] : memref<2x128xf32, #tpu.memory_space<vmem>>, vector<2x128xf32>
    tpu.vector_store %arg5[%c0_62, %c0_63], %149 {strides = array<i32>} : memref<2x128xf32, #tpu.memory_space<vmem>>, vector<2x128xf32>,
    %152 = arith.index_cast %c3_i32 : i32 to index
    %c0_64 = arith.constant 0 : index
    %c0_65 = arith.constant 0 : index
    %153 = vector.load %arg4[%152, %c0_64, %c0_65] : memref<8x2x128xf32, #tpu.memory_space<vmem>>, vector<1x2x128xf32>
    %154 = vector.shape_cast %153 : vector<1x2x128xf32> to vector<2x128xf32>
    %155 = vector.shape_cast %149 : vector<2x128xf32> to vector<1x2x128xf32>
    tpu.vector_store %arg4[%152, %c0_64, %c0_65], %155 {strides = array<i32>} : memref<8x2x128xf32, #tpu.memory_space<vmem>>, vector<1x2x128xf32>,
    %c4_i32 = arith.constant 4 : i32
    %156 = arith.index_cast %c4_i32 : i32 to index
    %c0_66 = arith.constant 0 : index
    %c0_67 = arith.constant 0 : index
    %157 = vector.load %arg2[%156, %c0_66, %c0_67] : memref<8x2x512xf32, #tpu.memory_space<vmem>>, vector<1x2x512xf32>
    %158 = vector.shape_cast %157 : vector<1x2x512xf32> to vector<2x512xf32>
    %c0_68 = arith.constant 0 : index
    %c0_69 = arith.constant 0 : index
    %159 = vector.load %arg5[%c0_68, %c0_69] : memref<2x128xf32, #tpu.memory_space<vmem>>, vector<2x128xf32>
    %cst_70 = arith.constant dense<0.000000e+00> : vector<2x512xf32>
    %160 = tpu.matmul %159, %3, %cst_70 {dimension_numbers = #tpu.dot_dimension_numbers<[1], [0], [0], [1], [0, 0, 1, 1], [], []>} : vector<2x128xf32>, vector<128x512xf32>, vector<2x512xf32> -> vector<2x512xf32>
    %161 = arith.addf %158, %160 : vector<2x512xf32>
    %162 = vector.extract_strided_slice %161 {offsets = [0, 0], sizes = [2, 128], strides = [1, 1]} : vector<2x512xf32> to vector<2x128xf32>
    %163 = arith.negf %162 : vector<2x128xf32>
    %164 = math.exp %163 : vector<2x128xf32>
    %cst_71 = arith.constant 1.000000e+00 : f32
    %165 = vector.broadcast %cst_71 : f32 to vector<2x128xf32>
    %166 = arith.addf %165, %164 : vector<2x128xf32>
    %167 = arith.divf %165, %166 : vector<2x128xf32>
    %168 = vector.extract_strided_slice %161 {offsets = [0, 128], sizes = [2, 128], strides = [1, 1]} : vector<2x512xf32> to vector<2x128xf32>
    %169 = arith.negf %168 : vector<2x128xf32>
    %170 = math.exp %169 : vector<2x128xf32>
    %cst_72 = arith.constant 1.000000e+00 : f32
    %171 = vector.broadcast %cst_72 : f32 to vector<2x128xf32>
    %172 = arith.addf %171, %170 : vector<2x128xf32>
    %173 = arith.divf %171, %172 : vector<2x128xf32>
    %174 = vector.extract_strided_slice %161 {offsets = [0, 256], sizes = [2, 128], strides = [1, 1]} : vector<2x512xf32> to vector<2x128xf32>
    %175 = math.tanh %174 : vector<2x128xf32>
    %176 = vector.extract_strided_slice %161 {offsets = [0, 384], sizes = [2, 128], strides = [1, 1]} : vector<2x512xf32> to vector<2x128xf32>
    %177 = arith.negf %176 : vector<2x128xf32>
    %178 = math.exp %177 : vector<2x128xf32>
    %cst_73 = arith.constant 1.000000e+00 : f32
    %179 = vector.broadcast %cst_73 : f32 to vector<2x128xf32>
    %180 = arith.addf %179, %178 : vector<2x128xf32>
    %181 = arith.divf %179, %180 : vector<2x128xf32>
    %c0_74 = arith.constant 0 : index
    %c0_75 = arith.constant 0 : index
    %182 = vector.load %arg6[%c0_74, %c0_75] : memref<2x128xf32, #tpu.memory_space<vmem>>, vector<2x128xf32>
    %183 = arith.mulf %173, %182 : vector<2x128xf32>
    %184 = arith.mulf %167, %175 : vector<2x128xf32>
    %185 = arith.addf %183, %184 : vector<2x128xf32>
    %186 = math.tanh %185 : vector<2x128xf32>
    %187 = arith.mulf %181, %186 : vector<2x128xf32>
    %c0_76 = arith.constant 0 : index
    %c0_77 = arith.constant 0 : index
    %188 = vector.load %arg6[%c0_76, %c0_77] : memref<2x128xf32, #tpu.memory_space<vmem>>, vector<2x128xf32>
    tpu.vector_store %arg6[%c0_76, %c0_77], %185 {strides = array<i32>} : memref<2x128xf32, #tpu.memory_space<vmem>>, vector<2x128xf32>,
    %c0_78 = arith.constant 0 : index
    %c0_79 = arith.constant 0 : index
    %189 = vector.load %arg5[%c0_78, %c0_79] : memref<2x128xf32, #tpu.memory_space<vmem>>, vector<2x128xf32>
    tpu.vector_store %arg5[%c0_78, %c0_79], %187 {strides = array<i32>} : memref<2x128xf32, #tpu.memory_space<vmem>>, vector<2x128xf32>,
    %190 = arith.index_cast %c4_i32 : i32 to index
    %c0_80 = arith.constant 0 : index
    %c0_81 = arith.constant 0 : index
    %191 = vector.load %arg4[%190, %c0_80, %c0_81] : memref<8x2x128xf32, #tpu.memory_space<vmem>>, vector<1x2x128xf32>
    %192 = vector.shape_cast %191 : vector<1x2x128xf32> to vector<2x128xf32>
    %193 = vector.shape_cast %187 : vector<2x128xf32> to vector<1x2x128xf32>
    tpu.vector_store %arg4[%190, %c0_80, %c0_81], %193 {strides = array<i32>} : memref<8x2x128xf32, #tpu.memory_space<vmem>>, vector<1x2x128xf32>,
    %c5_i32 = arith.constant 5 : i32
    %194 = arith.index_cast %c5_i32 : i32 to index
    %c0_82 = arith.constant 0 : index
    %c0_83 = arith.constant 0 : index
    %195 = vector.load %arg2[%194, %c0_82, %c0_83] : memref<8x2x512xf32, #tpu.memory_space<vmem>>, vector<1x2x512xf32>
    %196 = vector.shape_cast %195 : vector<1x2x512xf32> to vector<2x512xf32>
    %c0_84 = arith.constant 0 : index
    %c0_85 = arith.constant 0 : index
    %197 = vector.load %arg5[%c0_84, %c0_85] : memref<2x128xf32, #tpu.memory_space<vmem>>, vector<2x128xf32>
    %cst_86 = arith.constant dense<0.000000e+00> : vector<2x512xf32>
    %198 = tpu.matmul %197, %3, %cst_86 {dimension_numbers = #tpu.dot_dimension_numbers<[1], [0], [0], [1], [0, 0, 1, 1], [], []>} : vector<2x128xf32>, vector<128x512xf32>, vector<2x512xf32> -> vector<2x512xf32>
    %199 = arith.addf %196, %198 : vector<2x512xf32>
    %200 = vector.extract_strided_slice %199 {offsets = [0, 0], sizes = [2, 128], strides = [1, 1]} : vector<2x512xf32> to vector<2x128xf32>
    %201 = arith.negf %200 : vector<2x128xf32>
    %202 = math.exp %201 : vector<2x128xf32>
    %cst_87 = arith.constant 1.000000e+00 : f32
    %203 = vector.broadcast %cst_87 : f32 to vector<2x128xf32>
    %204 = arith.addf %203, %202 : vector<2x128xf32>
    %205 = arith.divf %203, %204 : vector<2x128xf32>
    %206 = vector.extract_strided_slice %199 {offsets = [0, 128], sizes = [2, 128], strides = [1, 1]} : vector<2x512xf32> to vector<2x128xf32>
    %207 = arith.negf %206 : vector<2x128xf32>
    %208 = math.exp %207 : vector<2x128xf32>
    %cst_88 = arith.constant 1.000000e+00 : f32
    %209 = vector.broadcast %cst_88 : f32 to vector<2x128xf32>
    %210 = arith.addf %209, %208 : vector<2x128xf32>
    %211 = arith.divf %209, %210 : vector<2x128xf32>
    %212 = vector.extract_strided_slice %199 {offsets = [0, 256], sizes = [2, 128], strides = [1, 1]} : vector<2x512xf32> to vector<2x128xf32>
    %213 = math.tanh %212 : vector<2x128xf32>
    %214 = vector.extract_strided_slice %199 {offsets = [0, 384], sizes = [2, 128], strides = [1, 1]} : vector<2x512xf32> to vector<2x128xf32>
    %215 = arith.negf %214 : vector<2x128xf32>
    %216 = math.exp %215 : vector<2x128xf32>
    %cst_89 = arith.constant 1.000000e+00 : f32
    %217 = vector.broadcast %cst_89 : f32 to vector<2x128xf32>
    %218 = arith.addf %217, %216 : vector<2x128xf32>
    %219 = arith.divf %217, %218 : vector<2x128xf32>
    %c0_90 = arith.constant 0 : index
    %c0_91 = arith.constant 0 : index
    %220 = vector.load %arg6[%c0_90, %c0_91] : memref<2x128xf32, #tpu.memory_space<vmem>>, vector<2x128xf32>
    %221 = arith.mulf %211, %220 : vector<2x128xf32>
    %222 = arith.mulf %205, %213 : vector<2x128xf32>
    %223 = arith.addf %221, %222 : vector<2x128xf32>
    %224 = math.tanh %223 : vector<2x128xf32>
    %225 = arith.mulf %219, %224 : vector<2x128xf32>
    %c0_92 = arith.constant 0 : index
    %c0_93 = arith.constant 0 : index
    %226 = vector.load %arg6[%c0_92, %c0_93] : memref<2x128xf32, #tpu.memory_space<vmem>>, vector<2x128xf32>
    tpu.vector_store %arg6[%c0_92, %c0_93], %223 {strides = array<i32>} : memref<2x128xf32, #tpu.memory_space<vmem>>, vector<2x128xf32>,
    %c0_94 = arith.constant 0 : index
    %c0_95 = arith.constant 0 : index
    %227 = vector.load %arg5[%c0_94, %c0_95] : memref<2x128xf32, #tpu.memory_space<vmem>>, vector<2x128xf32>
    tpu.vector_store %arg5[%c0_94, %c0_95], %225 {strides = array<i32>} : memref<2x128xf32, #tpu.memory_space<vmem>>, vector<2x128xf32>,
    %228 = arith.index_cast %c5_i32 : i32 to index
    %c0_96 = arith.constant 0 : index
    %c0_97 = arith.constant 0 : index
    %229 = vector.load %arg4[%228, %c0_96, %c0_97] : memref<8x2x128xf32, #tpu.memory_space<vmem>>, vector<1x2x128xf32>
    %230 = vector.shape_cast %229 : vector<1x2x128xf32> to vector<2x128xf32>
    %231 = vector.shape_cast %225 : vector<2x128xf32> to vector<1x2x128xf32>
    tpu.vector_store %arg4[%228, %c0_96, %c0_97], %231 {strides = array<i32>} : memref<8x2x128xf32, #tpu.memory_space<vmem>>, vector<1x2x128xf32>,
    %c6_i32 = arith.constant 6 : i32
    %232 = arith.index_cast %c6_i32 : i32 to index
    %c0_98 = arith.constant 0 : index
    %c0_99 = arith.constant 0 : index
    %233 = vector.load %arg2[%232, %c0_98, %c0_99] : memref<8x2x512xf32, #tpu.memory_space<vmem>>, vector<1x2x512xf32>
    %234 = vector.shape_cast %233 : vector<1x2x512xf32> to vector<2x512xf32>
    %c0_100 = arith.constant 0 : index
    %c0_101 = arith.constant 0 : index
    %235 = vector.load %arg5[%c0_100, %c0_101] : memref<2x128xf32, #tpu.memory_space<vmem>>, vector<2x128xf32>
    %cst_102 = arith.constant dense<0.000000e+00> : vector<2x512xf32>
    %236 = tpu.matmul %235, %3, %cst_102 {dimension_numbers = #tpu.dot_dimension_numbers<[1], [0], [0], [1], [0, 0, 1, 1], [], []>} : vector<2x128xf32>, vector<128x512xf32>, vector<2x512xf32> -> vector<2x512xf32>
    %237 = arith.addf %234, %236 : vector<2x512xf32>
    %238 = vector.extract_strided_slice %237 {offsets = [0, 0], sizes = [2, 128], strides = [1, 1]} : vector<2x512xf32> to vector<2x128xf32>
    %239 = arith.negf %238 : vector<2x128xf32>
    %240 = math.exp %239 : vector<2x128xf32>
    %cst_103 = arith.constant 1.000000e+00 : f32
    %241 = vector.broadcast %cst_103 : f32 to vector<2x128xf32>
    %242 = arith.addf %241, %240 : vector<2x128xf32>
    %243 = arith.divf %241, %242 : vector<2x128xf32>
    %244 = vector.extract_strided_slice %237 {offsets = [0, 128], sizes = [2, 128], strides = [1, 1]} : vector<2x512xf32> to vector<2x128xf32>
    %245 = arith.negf %244 : vector<2x128xf32>
    %246 = math.exp %245 : vector<2x128xf32>
    %cst_104 = arith.constant 1.000000e+00 : f32
    %247 = vector.broadcast %cst_104 : f32 to vector<2x128xf32>
    %248 = arith.addf %247, %246 : vector<2x128xf32>
    %249 = arith.divf %247, %248 : vector<2x128xf32>
    %250 = vector.extract_strided_slice %237 {offsets = [0, 256], sizes = [2, 128], strides = [1, 1]} : vector<2x512xf32> to vector<2x128xf32>
    %251 = math.tanh %250 : vector<2x128xf32>
    %252 = vector.extract_strided_slice %237 {offsets = [0, 384], sizes = [2, 128], strides = [1, 1]} : vector<2x512xf32> to vector<2x128xf32>
    %253 = arith.negf %252 : vector<2x128xf32>
    %254 = math.exp %253 : vector<2x128xf32>
    %cst_105 = arith.constant 1.000000e+00 : f32
    %255 = vector.broadcast %cst_105 : f32 to vector<2x128xf32>
    %256 = arith.addf %255, %254 : vector<2x128xf32>
    %257 = arith.divf %255, %256 : vector<2x128xf32>
    %c0_106 = arith.constant 0 : index
    %c0_107 = arith.constant 0 : index
    %258 = vector.load %arg6[%c0_106, %c0_107] : memref<2x128xf32, #tpu.memory_space<vmem>>, vector<2x128xf32>
    %259 = arith.mulf %249, %258 : vector<2x128xf32>
    %260 = arith.mulf %243, %251 : vector<2x128xf32>
    %261 = arith.addf %259, %260 : vector<2x128xf32>
    %262 = math.tanh %261 : vector<2x128xf32>
    %263 = arith.mulf %257, %262 : vector<2x128xf32>
    %c0_108 = arith.constant 0 : index
    %c0_109 = arith.constant 0 : index
    %264 = vector.load %arg6[%c0_108, %c0_109] : memref<2x128xf32, #tpu.memory_space<vmem>>, vector<2x128xf32>
    tpu.vector_store %arg6[%c0_108, %c0_109], %261 {strides = array<i32>} : memref<2x128xf32, #tpu.memory_space<vmem>>, vector<2x128xf32>,
    %c0_110 = arith.constant 0 : index
    %c0_111 = arith.constant 0 : index
    %265 = vector.load %arg5[%c0_110, %c0_111] : memref<2x128xf32, #tpu.memory_space<vmem>>, vector<2x128xf32>
    tpu.vector_store %arg5[%c0_110, %c0_111], %263 {strides = array<i32>} : memref<2x128xf32, #tpu.memory_space<vmem>>, vector<2x128xf32>,
    %266 = arith.index_cast %c6_i32 : i32 to index
    %c0_112 = arith.constant 0 : index
    %c0_113 = arith.constant 0 : index
    %267 = vector.load %arg4[%266, %c0_112, %c0_113] : memref<8x2x128xf32, #tpu.memory_space<vmem>>, vector<1x2x128xf32>
    %268 = vector.shape_cast %267 : vector<1x2x128xf32> to vector<2x128xf32>
    %269 = vector.shape_cast %263 : vector<2x128xf32> to vector<1x2x128xf32>
    tpu.vector_store %arg4[%266, %c0_112, %c0_113], %269 {strides = array<i32>} : memref<8x2x128xf32, #tpu.memory_space<vmem>>, vector<1x2x128xf32>,
    %c7_i32 = arith.constant 7 : i32
    %270 = arith.index_cast %c7_i32 : i32 to index
    %c0_114 = arith.constant 0 : index
    %c0_115 = arith.constant 0 : index
    %271 = vector.load %arg2[%270, %c0_114, %c0_115] : memref<8x2x512xf32, #tpu.memory_space<vmem>>, vector<1x2x512xf32>
    %272 = vector.shape_cast %271 : vector<1x2x512xf32> to vector<2x512xf32>
    %c0_116 = arith.constant 0 : index
    %c0_117 = arith.constant 0 : index
    %273 = vector.load %arg5[%c0_116, %c0_117] : memref<2x128xf32, #tpu.memory_space<vmem>>, vector<2x128xf32>
    %cst_118 = arith.constant dense<0.000000e+00> : vector<2x512xf32>
    %274 = tpu.matmul %273, %3, %cst_118 {dimension_numbers = #tpu.dot_dimension_numbers<[1], [0], [0], [1], [0, 0, 1, 1], [], []>} : vector<2x128xf32>, vector<128x512xf32>, vector<2x512xf32> -> vector<2x512xf32>
    %275 = arith.addf %272, %274 : vector<2x512xf32>
    %276 = vector.extract_strided_slice %275 {offsets = [0, 0], sizes = [2, 128], strides = [1, 1]} : vector<2x512xf32> to vector<2x128xf32>
    %277 = arith.negf %276 : vector<2x128xf32>
    %278 = math.exp %277 : vector<2x128xf32>
    %cst_119 = arith.constant 1.000000e+00 : f32
    %279 = vector.broadcast %cst_119 : f32 to vector<2x128xf32>
    %280 = arith.addf %279, %278 : vector<2x128xf32>
    %281 = arith.divf %279, %280 : vector<2x128xf32>
    %282 = vector.extract_strided_slice %275 {offsets = [0, 128], sizes = [2, 128], strides = [1, 1]} : vector<2x512xf32> to vector<2x128xf32>
    %283 = arith.negf %282 : vector<2x128xf32>
    %284 = math.exp %283 : vector<2x128xf32>
    %cst_120 = arith.constant 1.000000e+00 : f32
    %285 = vector.broadcast %cst_120 : f32 to vector<2x128xf32>
    %286 = arith.addf %285, %284 : vector<2x128xf32>
    %287 = arith.divf %285, %286 : vector<2x128xf32>
    %288 = vector.extract_strided_slice %275 {offsets = [0, 256], sizes = [2, 128], strides = [1, 1]} : vector<2x512xf32> to vector<2x128xf32>
    %289 = math.tanh %288 : vector<2x128xf32>
    %290 = vector.extract_strided_slice %275 {offsets = [0, 384], sizes = [2, 128], strides = [1, 1]} : vector<2x512xf32> to vector<2x128xf32>
    %291 = arith.negf %290 : vector<2x128xf32>
    %292 = math.exp %291 : vector<2x128xf32>
    %cst_121 = arith.constant 1.000000e+00 : f32
    %293 = vector.broadcast %cst_121 : f32 to vector<2x128xf32>
    %294 = arith.addf %293, %292 : vector<2x128xf32>
    %295 = arith.divf %293, %294 : vector<2x128xf32>
    %c0_122 = arith.constant 0 : index
    %c0_123 = arith.constant 0 : index
    %296 = vector.load %arg6[%c0_122, %c0_123] : memref<2x128xf32, #tpu.memory_space<vmem>>, vector<2x128xf32>
    %297 = arith.mulf %287, %296 : vector<2x128xf32>
    %298 = arith.mulf %281, %289 : vector<2x128xf32>
    %299 = arith.addf %297, %298 : vector<2x128xf32>
    %300 = math.tanh %299 : vector<2x128xf32>
    %301 = arith.mulf %295, %300 : vector<2x128xf32>
    %c0_124 = arith.constant 0 : index
    %c0_125 = arith.constant 0 : index
    %302 = vector.load %arg6[%c0_124, %c0_125] : memref<2x128xf32, #tpu.memory_space<vmem>>, vector<2x128xf32>
    tpu.vector_store %arg6[%c0_124, %c0_125], %299 {strides = array<i32>} : memref<2x128xf32, #tpu.memory_space<vmem>>, vector<2x128xf32>,
    %c0_126 = arith.constant 0 : index
    %c0_127 = arith.constant 0 : index
    %303 = vector.load %arg5[%c0_126, %c0_127] : memref<2x128xf32, #tpu.memory_space<vmem>>, vector<2x128xf32>
    tpu.vector_store %arg5[%c0_126, %c0_127], %301 {strides = array<i32>} : memref<2x128xf32, #tpu.memory_space<vmem>>, vector<2x128xf32>,
    %304 = arith.index_cast %c7_i32 : i32 to index
    %c0_128 = arith.constant 0 : index
    %c0_129 = arith.constant 0 : index
    %305 = vector.load %arg4[%304, %c0_128, %c0_129] : memref<8x2x128xf32, #tpu.memory_space<vmem>>, vector<1x2x128xf32>
    %306 = vector.shape_cast %305 : vector<1x2x128xf32> to vector<2x128xf32>
    %307 = vector.shape_cast %301 : vector<2x128xf32> to vector<1x2x128xf32>
    tpu.vector_store %arg4[%304, %c0_128, %c0_129], %307 {strides = array<i32>} : memref<8x2x128xf32, #tpu.memory_space<vmem>>, vector<1x2x128xf32>,
    %c8_i32 = arith.constant 8 : i32
    return
  }
  func.func @transform_0(%arg0: i32, %arg1: i32) -> (i32, i32, i32) {
    %c0_i32 = arith.constant 0 : i32
    %c0_i32_0 = arith.constant 0 : i32
    return %arg1, %arg0, %c0_i32 : i32, i32, i32
  }
  func.func @transform_2(%arg0: i32, %arg1: i32) -> (i32, i32, i32) {
    %c0_i32 = arith.constant 0 : i32
    %c0_i32_0 = arith.constant 0 : i32
    return %arg1, %arg0, %c0_i32 : i32, i32, i32
  }
}

</mosaic_0001>

<bundles_post_ra>
// kernel: tpu_custom_call.1
= control target key start
LH: loop header
LB: loop body
LE: loop exit
PB: predicated region body
PF: predicated region fallthrough
CT: control target
= control target key end

     0   :  { %7 = vsyncpa [#allocation6], 0  ;;  %s2884_s0 = inlined_call_operand.hbm [shape: f32[8,2,512], index: 0, kind: input, shape index: {}]   ;;  %s2885_s1 = inlined_call_operand.hbm [shape: f32[128,512], index: 1, kind: input, shape index: {}]   ;;  %s2886_s2 = inlined_call_operand.hbm [shape: f32[8,2,128], index: 2, kind: output, shape index: {}]  }
   0x1   :  { %8 = vsyncpa [#allocation7], 0  ;;  %s2047_s9 = smov [#allocation5]  }
   0x2   :  { %s14_s10 = sshll.u32 %s2047_s9, 4  ;;  %s15_s10 = int_to_ptr.vmem [resolvable:$true] %s14_s10 }
   0x3   :  { %s1989_s11 = scalar_lea.vmem %s15_s10, 1024  ;;  %p1994_p1 = scmp.lt.s32.totalorder %s15_s10, %s15_s10 }
   0x4   :  { %p1990_p0 = scmp.ne.s32.totalorder %s15_s10, %s1989_s11  ;;  %p1995_p2 = scmp.lt.s32.totalorder %s1989_s11, %s1989_s11 }
   0x6   :  { %p1996_p3 = por %p1995_p2, %p1994_p1 }
   0x8   :  { %p1997_p4 = pnand %p1996_p3, %p1990_p0 }
   0xa   :  { %2000 = shalt.err (!%p1997_p4)
}
   0xb   :  { %s2048_s12 = smov 128   ;;  %s2049_s13 = smov 8  }
   0xc   :  { %20 = dma.hbm_to_vmem [thread:$0]  %s2884_s0, 1024, %s15_s10, [#allocation6], %s2048_s12, %s2048_s12, %s2049_s13  }
   0xd   :  { %2041 = dma.done.wait [#allocation6], 1024  }
   0xe   :  { %2042 = vsyncadd [#allocation6], 4294966272 }
   0xf   :  { %s2050_s16 = smov [#allocation4]  }
  0x10   :  { %s35_s17 = sshll.u32 %s2050_s16, 4  ;;  %s36_s17 = int_to_ptr.vmem [resolvable:$true] %s35_s17 }
  0x11   :  { %s2009_s18 = scalar_lea.vmem %s36_s17, 8192  ;;  %p2014_p6 = scmp.lt.s32.totalorder %s36_s17, %s36_s17 }
  0x12   :  { %p2010_p5 = scmp.ne.s32.totalorder %s36_s17, %s2009_s18  ;;  %p2015_p7 = scmp.lt.s32.totalorder %s2009_s18, %s2009_s18 }
  0x14   :  { %p2016_p8 = por %p2015_p7, %p2014_p6 }
  0x16   :  { %p2017_p9 = pnand %p2016_p8, %p2010_p5 }
  0x18   :  { %2020 = shalt.err (!%p2017_p9)  }
  0x19   :  { %38 = dma.hbm_to_vmem [thread:$0]  %s2885_s1, 8192, %s36_s17, [#allocation9] }
  0x1a   :  { %2043 = dma.done.wait [#allocation9], 8192 }
  0x1b   :  { %2044 = vsyncadd [#allocation9], 4294959104  ;;  %v2077_v0 = vld [vmem:[#allocation4 + $0x1e8] sm:$0xff]  ;;  %v2079_v1 = vld [vmem:[#allocation4 + $0x1f8] sm:$0xff]  ;;  %v2887_v6 = vmov 0.0   ;;  %s2053_s0 = smov [#allocation8]  }
  0x1c   :  { %2978 = vst [vmem:[#allocation17_spill] sm:$0xff] %v2077_v0  ;;  %2979 = vst [vmem:[#allocation18_spill] sm:$0xff] %v2079_v1  ;;  %v2081_v2 = vld [vmem:[#allocation4 + $0x1e0] sm:$0xff]  ;;  %111 = vmatprep.subr.mxu0 %v2077_v0  ;;  %182 = vmatprep.subr.mxu1 %v2079_v1  ;;  %v2085_v3 = vld [vmem:[#allocation4 + $0x1f0] sm:$0xff]  ;;  %s1744_s1 = sshll.u32 %s2053_s0, 4  ;;  %s1745_s1 = int_to_ptr.vmem [resolvable:$true] %s1744_s1 }
  0x1d   :  { %v2087_v4 = vld [vmem:[#allocation4 + $0x1c8] sm:$0xff]  ;;  %v2089_v5 = vld [vmem:[#allocation4 + $0x1d8] sm:$0xff]  ;;  %43 = vst [vmem:[#allocation2] sm:$0x3] %v2887_v6  ;;  %44 = vst [vmem:[#allocation3] sm:$0x3] %v2887_v6  ;;  %112 = vmatpush1.msra.mxu0 %v2081_v2  ;;  %183 = vmatpush1.msra.mxu1 %v2085_v3  ;;  %p2026_p11 = scmp.lt.s32.totalorder %s1745_s1, %s1745_s1 }
  0x1e   :  { %v2095_v7 = vld [vmem:[#allocation4 + $0x1c0] sm:$0xff]  ;;  %v2097_v8 = vld [vmem:[#allocation4 + $0x1d0] sm:$0xff]  ;;  %v2099_v9 = vld [vmem:[#allocation4 + $0x1a8] sm:$0xff]  ;;  %113 = vmatprep.subr.mxu0 %v2087_v4  ;;  %184 = vmatprep.subr.mxu1 %v2089_v5  ;;  %s2021_s21 = scalar_lea.vmem %s1745_s1, 256 }
  0x1f   :  { %v2103_v10 = vld [vmem:[#allocation4 + $0x1b8] sm:$0xff]  ;;  %v2105_v11 = vld [vmem:[#allocation4 + $0x1a0] sm:$0xff]  ;;  %v2107_v12 = vld [vmem:[#allocation4 + $0x1b0] sm:$0xff]  ;;  %114 = vmatpush1.msra.mxu0 %v2095_v7  ;;  %185 = vmatpush1.msra.mxu1 %v2097_v8  ;;  %p2022_p10 = scmp.ne.s32.totalorder %s1745_s1, %s2021_s21  ;;  %p2027_p12 = scmp.lt.s32.totalorder %s2021_s21, %s2021_s21 }
  0x20   :  { %v2111_v13 = vld [vmem:[#allocation4 + $0x188] sm:$0xff]  ;;  %v2113_v14 = vld [vmem:[#allocation4 + $0x198] sm:$0xff]  ;;  %115 = vmatprep.subr.mxu0 %v2099_v9  ;;  %186 = vmatprep.subr.mxu1 %v2103_v10  ;;  %v2117_v15 = vld [vmem:[#allocation4 + $0x180] sm:$0xff] }
  0x21   :  { %v2119_v16 = vld [vmem:[#allocation4 + $0x190] sm:$0xff]  ;;  %116 = vmatpush1.msra.mxu0 %v2105_v11  ;;  %187 = vmatpush1.msra.mxu1 %v2107_v12  ;;  %v2123_v17 = vld [vmem:[#allocation4 + $0x168] sm:$0xff]  ;;  %v2125_v18 = vld [vmem:[#allocation4 + $0x178] sm:$0xff]  ;;  %p2028_p13 = por %p2027_p12, %p2026_p11 }
  0x22   :  { %117 = vmatprep.subr.mxu0 %v2111_v13  ;;  %188 = vmatprep.subr.mxu1 %v2113_v14  ;;  %v2129_v19 = vld [vmem:[#allocation4 + $0x160] sm:$0xff]  ;;  %v2131_v20 = vld [vmem:[#allocation4 + $0x170] sm:$0xff]  ;;  %v2135_v21 = vld [vmem:[#allocation4 + $0x148] sm:$0xff] }
  0x23   :  { %118 = vmatpush1.msra.mxu0 %v2117_v15  ;;  %189 = vmatpush1.msra.mxu1 %v2119_v16  ;;  %v2137_v22 = vld [vmem:[#allocation4 + $0x158] sm:$0xff]  ;;  %v2141_v23 = vld [vmem:[#allocation4 + $0x140] sm:$0xff]  ;;  %v2143_v24 = vld [vmem:[#allocation4 + $0x150] sm:$0xff]  ;;  %p2029_p0 = pnand %p2028_p13, %p2022_p10 }
  0x24   :  { %119 = vmatprep.subr.mxu0 %v2123_v17  ;;  %190 = vmatprep.subr.mxu1 %v2125_v18  ;;  %v2147_v25 = vld [vmem:[#allocation4 + $0x128] sm:$0xff]  ;;  %v2149_v26 = vld [vmem:[#allocation4 + $0x138] sm:$0xff]  ;;  %v2153_v27 = vld [vmem:[#allocation4 + $0x120] sm:$0xff] }
  0x25   :  { %120 = vmatpush1.msra.mxu0 %v2129_v19  ;;  %191 = vmatpush1.msra.mxu1 %v2131_v20  ;;  %v2155_v28 = vld [vmem:[#allocation4 + $0x130] sm:$0xff]  ;;  %v2159_v29 = vld [vmem:[#allocation4 + $0x108] sm:$0xff]  ;;  %v2161_v30 = vld [vmem:[#allocation4 + $0x118] sm:$0xff] }
  0x26   :  { %121 = vmatprep.subr.mxu0 %v2135_v21  ;;  %192 = vmatprep.subr.mxu1 %v2137_v22  ;;  %v2165_v31 = vld [vmem:[#allocation4 + $0x100] sm:$0xff]  ;;  %v2167_v32 = vld [vmem:[#allocation4 + $0x110] sm:$0xff]  ;;  %v2171_v33 = vld [vmem:[#allocation4 + $0xe8] sm:$0xff] }
  0x27   :  { %122 = vmatpush1.msra.mxu0 %v2141_v23  ;;  %193 = vmatpush1.msra.mxu1 %v2143_v24  ;;  %v2173_v34 = vld [vmem:[#allocation4 + $0xf8] sm:$0xff]  ;;  %v2177_v35 = vld [vmem:[#allocation4 + $0xe0] sm:$0xff]  ;;  %v2179_v36 = vld [vmem:[#allocation4 + $0xf0] sm:$0xff] }
  0x28   :  { %123 = vmatprep.subr.mxu0 %v2147_v25  ;;  %194 = vmatprep.subr.mxu1 %v2149_v26  ;;  %v2183_v37 = vld [vmem:[#allocation4 + $0xc8] sm:$0xff]  ;;  %v2185_v38 = vld [vmem:[#allocation4 + $0xd8] sm:$0xff]  ;;  %v2189_v39 = vld [vmem:[#allocation4 + $0xc0] sm:$0xff] }
  0x29   :  { %124 = vmatpush1.msra.mxu0 %v2153_v27  ;;  %195 = vmatpush1.msra.mxu1 %v2155_v28  ;;  %v2191_v40 = vld [vmem:[#allocation4 + $0xd0] sm:$0xff]  ;;  %v2195_v41 = vld [vmem:[#allocation4 + $0xa8] sm:$0xff]  ;;  %v2197_v42 = vld [vmem:[#allocation4 + $0xb8] sm:$0xff] }
  0x2a   :  { %125 = vmatprep.subr.mxu0 %v2159_v29  ;;  %196 = vmatprep.subr.mxu1 %v2161_v30  ;;  %v2201_v43 = vld [vmem:[#allocation4 + $0xa0] sm:$0xff]  ;;  %v2203_v44 = vld [vmem:[#allocation4 + $0xb0] sm:$0xff]  ;;  %v2207_v45 = vld [vmem:[#allocation4 + $0x88] sm:$0xff] }
  0x2b   :  { %126 = vmatpush1.msra.mxu0 %v2165_v31  ;;  %197 = vmatpush1.msra.mxu1 %v2167_v32  ;;  %2980 = vst [vmem:[#allocation19_spill] sm:$0xff] %v2207_v45  ;;  %v2209_v46 = vld [vmem:[#allocation4 + $0x98] sm:$0xff]  ;;  %v2213_v47 = vld [vmem:[#allocation4 + $0x80] sm:$0xff]  ;;  %v2215_v48 = vld [vmem:[#allocation4 + $0x90] sm:$0xff] }
  0x2c   :  { %127 = vmatprep.subr.mxu0 %v2171_v33  ;;  %198 = vmatprep.subr.mxu1 %v2173_v34  ;;  %2981 = vst [vmem:[#allocation20_spill] sm:$0xff] %v2209_v46  ;;  %2982 = vst [vmem:[#allocation21_spill] sm:$0xff] %v2213_v47  ;;  %v2219_v49 = vld [vmem:[#allocation4 + $0x68] sm:$0xff]  ;;  %v2221_v50 = vld [vmem:[#allocation4 + $0x78] sm:$0xff] }
  0x2d   :  { %128 = vmatpush1.msra.mxu0 %v2177_v35  ;;  %199 = vmatpush1.msra.mxu1 %v2179_v36  ;;  %2983 = vst [vmem:[#allocation22_spill] sm:$0xff] %v2215_v48  ;;  %2984 = vst [vmem:[#allocation23_spill] sm:$0xff] %v2219_v49  ;;  %v2225_v51 = vld [vmem:[#allocation4 + $0x60] sm:$0xff]  ;;  %v2227_v52 = vld [vmem:[#allocation4 + $0x70] sm:$0xff] }
  0x2e   :  { %129 = vmatprep.subr.mxu0 %v2183_v37  ;;  %200 = vmatprep.subr.mxu1 %v2185_v38  ;;  %2985 = vst [vmem:[#allocation24_spill] sm:$0xff] %v2221_v50  ;;  %2986 = vst [vmem:[#allocation25_spill] sm:$0xff] %v2225_v51  ;;  %v2231_v53 = vld [vmem:[#allocation4 + $0x48] sm:$0xff]  ;;  %v2233_v54 = vld [vmem:[#allocation4 + $0x58] sm:$0xff] }
  0x2f   :  { %130 = vmatpush1.msra.mxu0 %v2189_v39  ;;  %201 = vmatpush1.msra.mxu1 %v2191_v40  ;;  %2987 = vst [vmem:[#allocation26_spill] sm:$0xff] %v2227_v52  ;;  %2988 = vst [vmem:[#allocation27_spill] sm:$0xff] %v2231_v53  ;;  %v2237_v55 = vld [vmem:[#allocation4 + $0x40] sm:$0xff]  ;;  %v2239_v56 = vld [vmem:[#allocation4 + $0x50] sm:$0xff] }
  0x30   :  { %131 = vmatprep.subr.mxu0 %v2195_v41  ;;  %202 = vmatprep.subr.mxu1 %v2197_v42  ;;  %2989 = vst [vmem:[#allocation28_spill] sm:$0xff] %v2233_v54  ;;  %2990 = vst [vmem:[#allocation29_spill] sm:$0xff] %v2237_v55  ;;  %v2243_v57 = vld [vmem:[#allocation4 + $0x28] sm:$0xff]  ;;  %v2245_v58 = vld [vmem:[#allocation4 + $0x38] sm:$0xff] }
  0x31   :  { %132 = vmatpush1.msra.mxu0 %v2201_v43  ;;  %203 = vmatpush1.msra.mxu1 %v2203_v44  ;;  %2991 = vst [vmem:[#allocation30_spill] sm:$0xff] %v2239_v56  ;;  %2992 = vst [vmem:[#allocation31_spill] sm:$0xff] %v2243_v57  ;;  %v2249_v59 = vld [vmem:[#allocation4 + $0x20] sm:$0xff]  ;;  %v2251_v60 = vld [vmem:[#allocation4 + $0x30] sm:$0xff] }
  0x32   :  { %133 = vmatprep.subr.mxu0 %v2207_v45  ;;  %204 = vmatprep.subr.mxu1 %v2209_v46  ;;  %2993 = vst [vmem:[#allocation32_spill] sm:$0xff] %v2245_v58  ;;  %2994 = vst [vmem:[#allocation33_spill] sm:$0xff] %v2249_v59  ;;  %v2255_v61 = vld [vmem:[#allocation4 + $0x8] sm:$0xff]  ;;  %v2257_v62 = vld [vmem:[#allocation4 + $0x18] sm:$0xff] }
  0x33   :  { %134 = vmatpush1.msra.mxu0 %v2213_v47  ;;  %205 = vmatpush1.msra.mxu1 %v2215_v48  ;;  %2995 = vst [vmem:[#allocation34_spill] sm:$0xff] %v2251_v60  ;;  %2996 = vst [vmem:[#allocation35_spill] sm:$0xff] %v2255_v61  ;;  %v2261_v63 = vld [vmem:[#allocation4] sm:$0xff]  ;;  %v2265_v6 = vld [vmem:[#allocation4 + $0x10] sm:$0xff] }
  0x34   :  { %135 = vmatprep.subr.mxu0 %v2219_v49  ;;  %206 = vmatprep.subr.mxu1 %v2221_v50  ;;  %2997 = vst [vmem:[#allocation36_spill] sm:$0xff] %v2257_v62  ;;  %2998 = vst [vmem:[#allocation37_spill] sm:$0xff] %v2261_v63 }
  0x35   :  { %136 = vmatpush1.msra.mxu0 %v2225_v51  ;;  %207 = vmatpush1.msra.mxu1 %v2227_v52  ;;  %2999 = vst [vmem:[#allocation38_spill] sm:$0xff] %v2265_v6 }
  0x36   :  { %137 = vmatprep.subr.mxu0 %v2231_v53  ;;  %208 = vmatprep.subr.mxu1 %v2233_v54 }
  0x37   :  { %138 = vmatpush1.msra.mxu0 %v2237_v55  ;;  %209 = vmatpush1.msra.mxu1 %v2239_v56  ;;  %v110_v56 = vld [vmem:[#allocation2] sm:$0x3]  ;;  %v3000_v55 = vmov 0.0  }
  0x38   :  { %139 = vmatprep.subr.mxu0 %v2243_v57  ;;  %210 = vmatprep.subr.mxu1 %v2245_v58 }
  0x39   :  { %140 = vmatpush1.msra.mxu0 %v2249_v59  ;;  %211 = vmatpush1.msra.mxu1 %v2251_v60 }
  0x3a   :  { %141 = vmatprep.subr.mxu0 %v2255_v61  ;;  %212 = vmatprep.subr.mxu1 %v2257_v62 }
  0x3b   :  { %142 = vmatpush1.msra.mxu0 %v2261_v63  ;;  %175 = vmatprep.mubr.f32.mxu0 %v3000_v55 }
  0x3c   :  { %213 = vmatpush1.msra.mxu1 %v2265_v6  ;;  %246 = vmatprep.mubr.f32.mxu1 %v3000_v55 }
  0x3d   :  { %176 = vmatmul.mubr.f32.vlgmr.msra.gmra.mxu0 %v110_v56  ;;  %247 = vmatmul.mubr.f32.vlgmr.msra.gmra.mxu1 %v110_v56  ;;  %v3001_v56 = vld [vmem:[#allocation29_spill] sm:$0xff] }
  0x3e   :  { %314 = vmatprep.subr.mxu0 %v2077_v0  ;;  %385 = vmatprep.subr.mxu1 %v2079_v1 }
  0x3f   :  { %315 = vmatpush1.msra.mxu0 %v2081_v2  ;;  %386 = vmatpush1.msra.mxu1 %v2085_v3 }
  0x40   :  { %316 = vmatprep.subr.mxu0 %v2087_v4  ;;  %387 = vmatprep.subr.mxu1 %v2089_v5 }
  0x41   :  { %317 = vmatpush1.msra.mxu0 %v2095_v7  ;;  %388 = vmatpush1.msra.mxu1 %v2097_v8 }
  0x42   :  { %318 = vmatprep.subr.mxu0 %v2099_v9  ;;  %389 = vmatprep.subr.mxu1 %v2103_v10 }
  0x43   :  { %319 = vmatpush1.msra.mxu0 %v2105_v11  ;;  %390 = vmatpush1.msra.mxu1 %v2107_v12 }
  0x44   :  { %320 = vmatprep.subr.mxu0 %v2111_v13  ;;  %391 = vmatprep.subr.mxu1 %v2113_v14 }
  0x45   :  { %321 = vmatpush1.msra.mxu0 %v2117_v15  ;;  %392 = vmatpush1.msra.mxu1 %v2119_v16 }
  0x46   :  { %322 = vmatprep.subr.mxu0 %v2123_v17  ;;  %393 = vmatprep.subr.mxu1 %v2125_v18 }
  0x47   :  { %323 = vmatpush1.msra.mxu0 %v2129_v19  ;;  %394 = vmatpush1.msra.mxu1 %v2131_v20 }
  0x48   :  { %324 = vmatprep.subr.mxu0 %v2135_v21  ;;  %395 = vmatprep.subr.mxu1 %v2137_v22 }
  0x49   :  { %325 = vmatpush1.msra.mxu0 %v2141_v23  ;;  %396 = vmatpush1.msra.mxu1 %v2143_v24 }
  0x4a   :  { %326 = vmatprep.subr.mxu0 %v2147_v25  ;;  %397 = vmatprep.subr.mxu1 %v2149_v26 }
  0x4b   :  { %327 = vmatpush1.msra.mxu0 %v2153_v27  ;;  %398 = vmatpush1.msra.mxu1 %v2155_v28 }
  0x4c   :  { %328 = vmatprep.subr.mxu0 %v2159_v29  ;;  %399 = vmatprep.subr.mxu1 %v2161_v30 }
  0x4d   :  { %329 = vmatpush1.msra.mxu0 %v2165_v31  ;;  %400 = vmatpush1.msra.mxu1 %v2167_v32 }
  0x4e   :  { %330 = vmatprep.subr.mxu0 %v2171_v33  ;;  %401 = vmatprep.subr.mxu1 %v2173_v34 }
  0x4f   :  { %331 = vmatpush1.msra.mxu0 %v2177_v35  ;;  %402 = vmatpush1.msra.mxu1 %v2179_v36 }
  0x50   :  { %332 = vmatprep.subr.mxu0 %v2183_v37  ;;  %403 = vmatprep.subr.mxu1 %v2185_v38 }
  0x51   :  { %333 = vmatpush1.msra.mxu0 %v2189_v39  ;;  %404 = vmatpush1.msra.mxu1 %v2191_v40 }
  0x52   :  { %334 = vmatprep.subr.mxu0 %v2195_v41  ;;  %405 = vmatprep.subr.mxu1 %v2197_v42 }
  0x53   :  { %335 = vmatpush1.msra.mxu0 %v2201_v43  ;;  %406 = vmatpush1.msra.mxu1 %v2203_v44 }
  0x54   :  { %336 = vmatprep.subr.mxu0 %v2207_v45  ;;  %407 = vmatprep.subr.mxu1 %v2209_v46  ;;  %v3002_v45 = vld [vmem:[#allocation30_spill] sm:$0xff] }
  0x55   :  { %337 = vmatpush1.msra.mxu0 %v2213_v47  ;;  %408 = vmatpush1.msra.mxu1 %v2215_v48 }
  0x56   :  { %338 = vmatprep.subr.mxu0 %v2219_v49  ;;  %409 = vmatprep.subr.mxu1 %v2221_v50 }
  0x57   :  { %339 = vmatpush1.msra.mxu0 %v2225_v51  ;;  %410 = vmatpush1.msra.mxu1 %v2227_v52 }
  0x58   :  { %340 = vmatprep.subr.mxu0 %v2231_v53  ;;  %411 = vmatprep.subr.mxu1 %v2233_v54 }
  0x59   :  { %341 = vmatpush1.msra.mxu0 %v3001_v56  ;;  %412 = vmatpush1.msra.mxu1 %v3002_v45 }
  0x5a   :  { %342 = vmatprep.subr.mxu0 %v2243_v57  ;;  %413 = vmatprep.subr.mxu1 %v2245_v58  ;;  %v2052_v58 = vmov 1983009808   ;;  %v262_v57 = vlaneseq }
  0x5b   :  { %343 = vmatpush1.msra.mxu0 %v2249_v59  ;;  %414 = vmatpush1.msra.mxu1 %v2251_v60  ;;  %v260_v59 = vunpack.c.l.s4 %v2052_v58 }
  0x5c   :  { %344 = vmatprep.subr.mxu0 %v2255_v61  ;;  %415 = vmatprep.subr.mxu1 %v2257_v62  ;;  %v263_v45 = vshrl.u32 %v262_v57, 7 }
  0x5d   :  { %345 = vmatpush1.msra.mxu0 %v2261_v63  ;;  %378 = vmatprep.mubr.f32.mxu0 %v3000_v55  ;;  %v261_v60 = vunpack.c.0.s8 %v260_v59 }
  0x5e   :  { %416 = vmatpush1.msra.mxu1 %v2265_v6  ;;  %449 = vmatprep.mubr.f32.mxu1 %v3000_v55 }
  0x5f   :  { %518 = vmatprep.subr.mxu0 %v2077_v0  ;;  %589 = vmatprep.subr.mxu1 %v2079_v1  ;;  %v2341_v62 = vsub.s32 %v261_v60, %v263_v45  ;;  %v109_v0 = vld [vmem:[#allocation5] sm:$0xff] }
  0xfd   :  { %v177_v61 = vpop.f32.mrf.mxu0  ;;  %v248_v56 = vpop.f32.mrf.mxu1 }
  0xff   :  { %v179_v63 = vpop.f32.mrf.mxu0  ;;  %v250_v54 = vpop.f32.mrf.mxu1 }
 0x100   :  { %v257_v53 = vcombine.low %v177_v61, %v179_v63  ;;  %v258_v52 = vcombine.low %v248_v56, %v250_v54 }
 0x102   :  { %v265_v6 = vrot.slane %v257_v53, %v2341_v62  ;;  %v272_v55 = vrot.slane %v258_v52, %v2341_v62 }
 0x104   :  { %v273_v51 = vcombine.low %v265_v6, %v272_v55  ;;  %v302_v6 = vld [vmem:[#allocation3] sm:$0x3] }
 0x106   :  { %v275_v1 = vadd.f32 %v273_v51, %v109_v0 }
 0x108   :  { %v1756_v50 = vmul.f32 -1.442695, %v275_v1  ;;  %v283_v58 = vrot.slane %v275_v1, 2  ;;  %v294_v57 = vrot.slane %v275_v1, 6  ;;  %v291_v60 = vrot.slane %v275_v1, 4 }
 0x10a   :  { %1789 = vpow2.f32 %v1756_v50  ;;  %v1757_v59 = vmul.f32 -1.442695, %v283_v58  ;;  %v1758_v49 = vmul.f32 -1.442695, %v294_v57  ;;  %v3006_v57 = vld [vmem:[#allocation23_spill] sm:$0xff] }
 0x10c   :  { %1791 = vpow2.f32 %v1757_v59  ;;  %v3005_v59 = vld [vmem:[#allocation22_spill] sm:$0xff] }
 0x10d   :  { %1793 = vpow2.f32 %v1758_v49  ;;  %v3004_v49 = vld [vmem:[#allocation21_spill] sm:$0xff] }
 0x117   :  { %v1790_v45 = vpop.eup %1789 }
 0x118   :  { %v279_v48 = vadd.f32 1.0, %v1790_v45  ;;  %v3007_v45 = vld [vmem:[#allocation24_spill] sm:$0xff] }
 0x119   :  { %v1792_v47 = vpop.eup %1791 }
 0x11a   :  { %1795 = vrcp.f32 %v279_v48  ;;  %v288_v54 = vadd.f32 1.0, %v1792_v47  ;;  %v1794_v52 = vpop.eup %1793  ;;  %v3003_v48 = vld [vmem:[#allocation19_spill] sm:$0xff] }
 0x11b   :  { %1797 = vtanh.f32 %v291_v60  ;;  %v299_v55 = vadd.f32 1.0, %v1794_v52  ;;  %v3008_v60 = vld [vmem:[#allocation25_spill] sm:$0xff]  ;;  %v3010_v52 = vld [vmem:[#allocation27_spill] sm:$0xff] }
 0x11c   :  { %1799 = vrcp.f32 %v288_v54  ;;  %v3009_v54 = vld [vmem:[#allocation26_spill] sm:$0xff] }
 0x11d   :  { %1801 = vrcp.f32 %v299_v55  ;;  %v3015_v55 = vld [vmem:[#allocation32_spill] sm:$0xff] }
 0x127   :  { %v1796_v53 = vpop.eup %1795 }
 0x128   :  { %v1798_v0 = vpop.eup %1797 }
 0x129   :  { %v1800_v51 = vpop.eup %1799  ;;  %v304_v61 = vmul.f32 %v1798_v0, %v1796_v53  ;;  %v3011_v53 = vld [vmem:[#allocation28_spill] sm:$0xff]  ;;  %v3013_v0 = vld [vmem:[#allocation30_spill] sm:$0xff] }
 0x12a   :  { %v303_v50 = vmul.f32 %v1800_v51, %v302_v6  ;;  %v1802_v1 = vpop.eup %1801  ;;  %v3012_v6 = vld [vmem:[#allocation29_spill] sm:$0xff]  ;;  %v3014_v51 = vld [vmem:[#allocation31_spill] sm:$0xff] }
 0x12c   :  { %v305_v63 = vadd.f32 %v304_v61, %v303_v50  ;;  %v3016_v50 = vld [vmem:[#allocation33_spill] sm:$0xff]  ;;  %v3017_v61 = vld [vmem:[#allocation34_spill] sm:$0xff] }
 0x12e   :  { %1803 = vtanh.f32 %v305_v63  ;;  %308 = vst [vmem:[#allocation3] sm:$0x3] %v305_v63  ;;  %v3018_v63 = vld [vmem:[#allocation35_spill] sm:$0xff] }
 0x13b   :  { %v1804_v56 = vpop.eup %1803 }
 0x13c   :  { %v307_v58 = vmul.f32 %v1804_v56, %v1802_v1  ;;  %v3019_v1 = vld [vmem:[#allocation36_spill] sm:$0xff]  ;;  %v3020_v56 = vld [vmem:[#allocation37_spill] sm:$0xff] }
 0x13e   :  { %309 = vst [vmem:[#allocation2] sm:$0x3] %v307_v58  ;;  %310 = vst [vmem:[#allocation8] sm:$0x3] %v307_v58  ;;  %v3021_v58 = vmov 0.0  }
 0x145   :  { %v313_v47 = vld [vmem:[#allocation2] sm:$0x3] }
 0x146   :  { %379 = vmatmul.mubr.f32.vlgmr.msra.gmra.mxu0 %v313_v47  ;;  %450 = vmatmul.mubr.f32.vlgmr.msra.gmra.mxu1 %v313_v47  ;;  %v3022_v47 = vld [vmem:[#allocation38_spill] sm:$0xff] }
 0x147   :  { %519 = vmatpush1.msra.mxu0 %v2081_v2  ;;  %590 = vmatpush1.msra.mxu1 %v2085_v3 }
 0x148   :  { %520 = vmatprep.subr.mxu0 %v2087_v4  ;;  %591 = vmatprep.subr.mxu1 %v2089_v5 }
 0x149   :  { %521 = vmatpush1.msra.mxu0 %v2095_v7  ;;  %592 = vmatpush1.msra.mxu1 %v2097_v8 }
 0x14a   :  { %522 = vmatprep.subr.mxu0 %v2099_v9  ;;  %593 = vmatprep.subr.mxu1 %v2103_v10 }
 0x14b   :  { %523 = vmatpush1.msra.mxu0 %v2105_v11  ;;  %594 = vmatpush1.msra.mxu1 %v2107_v12 }
 0x14c   :  { %524 = vmatprep.subr.mxu0 %v2111_v13  ;;  %595 = vmatprep.subr.mxu1 %v2113_v14 }
 0x14d   :  { %525 = vmatpush1.msra.mxu0 %v2117_v15  ;;  %596 = vmatpush1.msra.mxu1 %v2119_v16 }
 0x14e   :  { %526 = vmatprep.subr.mxu0 %v2123_v17  ;;  %597 = vmatprep.subr.mxu1 %v2125_v18 }
 0x14f   :  { %527 = vmatpush1.msra.mxu0 %v2129_v19  ;;  %598 = vmatpush1.msra.mxu1 %v2131_v20 }
 0x150   :  { %528 = vmatprep.subr.mxu0 %v2135_v21  ;;  %599 = vmatprep.subr.mxu1 %v2137_v22 }
 0x151   :  { %529 = vmatpush1.msra.mxu0 %v2141_v23  ;;  %600 = vmatpush1.msra.mxu1 %v2143_v24 }
 0x152   :  { %530 = vmatprep.subr.mxu0 %v2147_v25  ;;  %601 = vmatprep.subr.mxu1 %v2149_v26 }
 0x153   :  { %531 = vmatpush1.msra.mxu0 %v2153_v27  ;;  %602 = vmatpush1.msra.mxu1 %v2155_v28 }
 0x154   :  { %532 = vmatprep.subr.mxu0 %v2159_v29  ;;  %603 = vmatprep.subr.mxu1 %v2161_v30 }
 0x155   :  { %533 = vmatpush1.msra.mxu0 %v2165_v31  ;;  %604 = vmatpush1.msra.mxu1 %v2167_v32 }
 0x156   :  { %534 = vmatprep.subr.mxu0 %v2171_v33  ;;  %605 = vmatprep.subr.mxu1 %v2173_v34 }
 0x157   :  { %535 = vmatpush1.msra.mxu0 %v2177_v35  ;;  %606 = vmatpush1.msra.mxu1 %v2179_v36 }
 0x158   :  { %536 = vmatprep.subr.mxu0 %v2183_v37  ;;  %607 = vmatprep.subr.mxu1 %v2185_v38 }
 0x159   :  { %537 = vmatpush1.msra.mxu0 %v2189_v39  ;;  %608 = vmatpush1.msra.mxu1 %v2191_v40 }
 0x15a   :  { %538 = vmatprep.subr.mxu0 %v2195_v41  ;;  %609 = vmatprep.subr.mxu1 %v2197_v42 }
 0x15b   :  { %539 = vmatpush1.msra.mxu0 %v2201_v43  ;;  %610 = vmatpush1.msra.mxu1 %v2203_v44 }
 0x15c   :  { %540 = vmatprep.subr.mxu0 %v3003_v48  ;;  %611 = vmatprep.subr.mxu1 %v2209_v46 }
 0x15d   :  { %541 = vmatpush1.msra.mxu0 %v3004_v49  ;;  %612 = vmatpush1.msra.mxu1 %v3005_v59 }
 0x15e   :  { %542 = vmatprep.subr.mxu0 %v3006_v57  ;;  %613 = vmatprep.subr.mxu1 %v3007_v45 }
 0x15f   :  { %543 = vmatpush1.msra.mxu0 %v3008_v60  ;;  %614 = vmatpush1.msra.mxu1 %v3009_v54 }
 0x160   :  { %544 = vmatprep.subr.mxu0 %v3010_v52  ;;  %615 = vmatprep.subr.mxu1 %v3011_v53  ;;  %v312_v52 = vld [vmem:[#allocation5 + $0x8] sm:$0xff] }
 0x161   :  { %545 = vmatpush1.msra.mxu0 %v3012_v6  ;;  %616 = vmatpush1.msra.mxu1 %v3013_v0  ;;  %v3023_v0 = vld [vmem:[#allocation17_spill] sm:$0xff] }
 0x162   :  { %546 = vmatprep.subr.mxu0 %v3014_v51  ;;  %617 = vmatprep.subr.mxu1 %v3015_v55  ;;  %v3024_v51 = vld [vmem:[#allocation18_spill] sm:$0xff] }
 0x163   :  { %547 = vmatpush1.msra.mxu0 %v3016_v50  ;;  %618 = vmatpush1.msra.mxu1 %v3017_v61 }
 0x164   :  { %548 = vmatprep.subr.mxu0 %v3018_v63  ;;  %619 = vmatprep.subr.mxu1 %v3019_v1 }
 0x165   :  { %549 = vmatpush1.msra.mxu0 %v3020_v56  ;;  %582 = vmatprep.mubr.f32.mxu0 %v3021_v58 }
 0x166   :  { %620 = vmatpush1.msra.mxu1 %v3022_v47  ;;  %653 = vmatprep.mubr.f32.mxu1 %v3021_v58 }
 0x167   :  { %722 = vmatprep.subr.mxu0 %v3023_v0  ;;  %793 = vmatprep.subr.mxu1 %v3024_v51 }
 0x206   :  { %v380_v55 = vpop.f32.mrf.mxu0  ;;  %v451_v50 = vpop.f32.mrf.mxu1 }
 0x208   :  { %v382_v6 = vpop.f32.mrf.mxu0  ;;  %v453_v61 = vpop.f32.mrf.mxu1 }
 0x209   :  { %v460_v53 = vcombine.low %v380_v55, %v382_v6  ;;  %v461_v63 = vcombine.low %v451_v50, %v453_v61  ;;  %v505_v61 = vld [vmem:[#allocation3] sm:$0x3] }
 0x20b   :  { %v468_v1 = vrot.slane %v460_v53, %v2341_v62  ;;  %v475_v56 = vrot.slane %v461_v63, %v2341_v62 }
 0x20d   :  { %v476_v54 = vcombine.low %v468_v1, %v475_v56  ;;  %v3028_v56 = vld [vmem:[#allocation23_spill] sm:$0xff] }
 0x20f   :  { %v478_v60 = vadd.f32 %v476_v54, %v312_v52 }
 0x211   :  { %v1759_v47 = vmul.f32 -1.442695, %v478_v60  ;;  %v486_v45 = vrot.slane %v478_v60, 2  ;;  %v497_v0 = vrot.slane %v478_v60, 6  ;;  %v494_v59 = vrot.slane %v478_v60, 4 }
 0x213   :  { %1805 = vpow2.f32 %v1759_v47  ;;  %v1760_v58 = vmul.f32 -1.442695, %v486_v45  ;;  %v1761_v51 = vmul.f32 -1.442695, %v497_v0  ;;  %v3030_v47 = vld [vmem:[#allocation25_spill] sm:$0xff] }
 0x215   :  { %1807 = vpow2.f32 %v1760_v58  ;;  %v3029_v58 = vld [vmem:[#allocation24_spill] sm:$0xff] }
 0x216   :  { %1809 = vpow2.f32 %v1761_v51  ;;  %v3027_v51 = vld [vmem:[#allocation22_spill] sm:$0xff] }
 0x220   :  { %v1806_v57 = vpop.eup %1805 }
 0x221   :  { %v482_v49 = vadd.f32 1.0, %v1806_v57 }
 0x222   :  { %v1808_v46 = vpop.eup %1807 }
 0x223   :  { %1811 = vrcp.f32 %v482_v49  ;;  %v491_v6 = vadd.f32 1.0, %v1808_v46  ;;  %v1810_v53 = vpop.eup %1809  ;;  %v3025_v49 = vld [vmem:[#allocation20_spill] sm:$0xff] }
 0x224   :  { %1813 = vtanh.f32 %v494_v59  ;;  %v502_v52 = vadd.f32 1.0, %v1810_v53  ;;  %v3026_v59 = vld [vmem:[#allocation21_spill] sm:$0xff]  ;;  %v3032_v53 = vld [vmem:[#allocation27_spill] sm:$0xff] }
 0x225   :  { %1815 = vrcp.f32 %v491_v6  ;;  %v3031_v6 = vld [vmem:[#allocation26_spill] sm:$0xff] }
 0x226   :  { %1817 = vrcp.f32 %v502_v52  ;;  %v3036_v52 = vld [vmem:[#allocation31_spill] sm:$0xff] }
 0x230   :  { %v1812_v55 = vpop.eup %1811 }
 0x231   :  { %v1814_v50 = vpop.eup %1813 }
 0x232   :  { %v1816_v54 = vpop.eup %1815  ;;  %v507_v45 = vmul.f32 %v1814_v50, %v1812_v55  ;;  %v3033_v55 = vld [vmem:[#allocation28_spill] sm:$0xff]  ;;  %v3034_v50 = vld [vmem:[#allocation29_spill] sm:$0xff] }
 0x233   :  { %v506_v63 = vmul.f32 %v1816_v54, %v505_v61  ;;  %v1818_v60 = vpop.eup %1817  ;;  %v3035_v54 = vld [vmem:[#allocation30_spill] sm:$0xff]  ;;  %v3037_v61 = vld [vmem:[#allocation32_spill] sm:$0xff] }
 0x235   :  { %v508_v1 = vadd.f32 %v507_v45, %v506_v63  ;;  %v3038_v63 = vld [vmem:[#allocation33_spill] sm:$0xff]  ;;  %v3039_v45 = vld [vmem:[#allocation34_spill] sm:$0xff] }
 0x237   :  { %1819 = vtanh.f32 %v508_v1  ;;  %511 = vst [vmem:[#allocation3] sm:$0x3] %v508_v1  ;;  %v3040_v1 = vld [vmem:[#allocation35_spill] sm:$0xff] }
 0x244   :  { %v1820_v57 = vpop.eup %1819 }
 0x245   :  { %v510_v0 = vmul.f32 %v1820_v57, %v1818_v60  ;;  %v3041_v60 = vld [vmem:[#allocation36_spill] sm:$0xff]  ;;  %v3042_v57 = vld [vmem:[#allocation37_spill] sm:$0xff] }
 0x247   :  { %512 = vst [vmem:[#allocation2] sm:$0x3] %v510_v0  ;;  %514 = vst [vmem:[#allocation8 + $0x2] sm:$0x3] %v510_v0  ;;  %v3043_v0 = vmov 0.0  }
 0x24e   :  { %v517_v46 = vld [vmem:[#allocation2] sm:$0x3] }
 0x24f   :  { %583 = vmatmul.mubr.f32.vlgmr.msra.gmra.mxu0 %v517_v46  ;;  %654 = vmatmul.mubr.f32.vlgmr.msra.gmra.mxu1 %v517_v46  ;;  %v3044_v46 = vld [vmem:[#allocation38_spill] sm:$0xff] }
 0x250   :  { %723 = vmatpush1.msra.mxu0 %v2081_v2  ;;  %794 = vmatpush1.msra.mxu1 %v2085_v3 }
 0x251   :  { %724 = vmatprep.subr.mxu0 %v2087_v4  ;;  %795 = vmatprep.subr.mxu1 %v2089_v5 }
 0x252   :  { %725 = vmatpush1.msra.mxu0 %v2095_v7  ;;  %796 = vmatpush1.msra.mxu1 %v2097_v8 }
 0x253   :  { %726 = vmatprep.subr.mxu0 %v2099_v9  ;;  %797 = vmatprep.subr.mxu1 %v2103_v10 }
 0x254   :  { %727 = vmatpush1.msra.mxu0 %v2105_v11  ;;  %798 = vmatpush1.msra.mxu1 %v2107_v12 }
 0x255   :  { %728 = vmatprep.subr.mxu0 %v2111_v13  ;;  %799 = vmatprep.subr.mxu1 %v2113_v14 }
 0x256   :  { %729 = vmatpush1.msra.mxu0 %v2117_v15  ;;  %800 = vmatpush1.msra.mxu1 %v2119_v16 }
 0x257   :  { %730 = vmatprep.subr.mxu0 %v2123_v17  ;;  %801 = vmatprep.subr.mxu1 %v2125_v18 }
 0x258   :  { %731 = vmatpush1.msra.mxu0 %v2129_v19  ;;  %802 = vmatpush1.msra.mxu1 %v2131_v20 }
 0x259   :  { %732 = vmatprep.subr.mxu0 %v2135_v21  ;;  %803 = vmatprep.subr.mxu1 %v2137_v22 }
 0x25a   :  { %733 = vmatpush1.msra.mxu0 %v2141_v23  ;;  %804 = vmatpush1.msra.mxu1 %v2143_v24 }
 0x25b   :  { %734 = vmatprep.subr.mxu0 %v2147_v25  ;;  %805 = vmatprep.subr.mxu1 %v2149_v26 }
 0x25c   :  { %735 = vmatpush1.msra.mxu0 %v2153_v27  ;;  %806 = vmatpush1.msra.mxu1 %v2155_v28 }
 0x25d   :  { %736 = vmatprep.subr.mxu0 %v2159_v29  ;;  %807 = vmatprep.subr.mxu1 %v2161_v30 }
 0x25e   :  { %737 = vmatpush1.msra.mxu0 %v2165_v31  ;;  %808 = vmatpush1.msra.mxu1 %v2167_v32 }
 0x25f   :  { %738 = vmatprep.subr.mxu0 %v2171_v33  ;;  %809 = vmatprep.subr.mxu1 %v2173_v34 }
 0x260   :  { %739 = vmatpush1.msra.mxu0 %v2177_v35  ;;  %810 = vmatpush1.msra.mxu1 %v2179_v36 }
 0x261   :  { %740 = vmatprep.subr.mxu0 %v2183_v37  ;;  %811 = vmatprep.subr.mxu1 %v2185_v38 }
 0x262   :  { %741 = vmatpush1.msra.mxu0 %v2189_v39  ;;  %812 = vmatpush1.msra.mxu1 %v2191_v40 }
 0x263   :  { %742 = vmatprep.subr.mxu0 %v2195_v41  ;;  %813 = vmatprep.subr.mxu1 %v2197_v42 }
 0x264   :  { %743 = vmatpush1.msra.mxu0 %v2201_v43  ;;  %814 = vmatpush1.msra.mxu1 %v2203_v44 }
 0x265   :  { %744 = vmatprep.subr.mxu0 %v3003_v48  ;;  %815 = vmatprep.subr.mxu1 %v3025_v49 }
 0x266   :  { %745 = vmatpush1.msra.mxu0 %v3026_v59  ;;  %816 = vmatpush1.msra.mxu1 %v3027_v51 }
 0x267   :  { %746 = vmatprep.subr.mxu0 %v3028_v56  ;;  %817 = vmatprep.subr.mxu1 %v3029_v58 }
 0x268   :  { %747 = vmatpush1.msra.mxu0 %v3030_v47  ;;  %818 = vmatpush1.msra.mxu1 %v3031_v6 }
 0x269   :  { %748 = vmatprep.subr.mxu0 %v3032_v53  ;;  %819 = vmatprep.subr.mxu1 %v3033_v55  ;;  %v516_v53 = vld [vmem:[#allocation5 + $0x10] sm:$0xff] }
 0x26a   :  { %749 = vmatpush1.msra.mxu0 %v3034_v50  ;;  %820 = vmatpush1.msra.mxu1 %v3035_v54  ;;  %v3045_v54 = vld [vmem:[#allocation17_spill] sm:$0xff] }
 0x26b   :  { %750 = vmatprep.subr.mxu0 %v3036_v52  ;;  %821 = vmatprep.subr.mxu1 %v3037_v61  ;;  %v3046_v52 = vld [vmem:[#allocation18_spill] sm:$0xff] }
 0x26c   :  { %751 = vmatpush1.msra.mxu0 %v3038_v63  ;;  %822 = vmatpush1.msra.mxu1 %v3039_v45 }
 0x26d   :  { %752 = vmatprep.subr.mxu0 %v3040_v1  ;;  %823 = vmatprep.subr.mxu1 %v3041_v60 }
 0x26e   :  { %753 = vmatpush1.msra.mxu0 %v3042_v57  ;;  %786 = vmatprep.mubr.f32.mxu0 %v3043_v0 }
 0x26f   :  { %824 = vmatpush1.msra.mxu1 %v3044_v46  ;;  %857 = vmatprep.mubr.f32.mxu1 %v3043_v0 }
 0x270   :  { %926 = vmatprep.subr.mxu0 %v3045_v54  ;;  %997 = vmatprep.subr.mxu1 %v3046_v52 }
 0x30f   :  { %v584_v61 = vpop.f32.mrf.mxu0  ;;  %v655_v63 = vpop.f32.mrf.mxu1 }
 0x311   :  { %v586_v50 = vpop.f32.mrf.mxu0  ;;  %v657_v45 = vpop.f32.mrf.mxu1 }
 0x312   :  { %v664_v55 = vcombine.low %v584_v61, %v586_v50  ;;  %v665_v1 = vcombine.low %v655_v63, %v657_v45  ;;  %v709_v45 = vld [vmem:[#allocation3] sm:$0x3] }
 0x314   :  { %v672_v60 = vrot.slane %v664_v55, %v2341_v62  ;;  %v679_v57 = vrot.slane %v665_v1, %v2341_v62 }
 0x316   :  { %v680_v6 = vcombine.low %v672_v60, %v679_v57 }
 0x318   :  { %v682_v47 = vadd.f32 %v680_v6, %v516_v53 }
 0x31a   :  { %v1762_v46 = vmul.f32 -1.442695, %v682_v47  ;;  %v690_v58 = vrot.slane %v682_v47, 2  ;;  %v701_v54 = vrot.slane %v682_v47, 6  ;;  %v698_v51 = vrot.slane %v682_v47, 4 }
 0x31c   :  { %1821 = vpow2.f32 %v1762_v46  ;;  %v1763_v0 = vmul.f32 -1.442695, %v690_v58  ;;  %v1764_v52 = vmul.f32 -1.442695, %v701_v54 }
 0x31e   :  { %1823 = vpow2.f32 %v1763_v0 }
 0x31f   :  { %1825 = vpow2.f32 %v1764_v52 }
 0x329   :  { %v1822_v56 = vpop.eup %1821 }
 0x32a   :  { %v686_v59 = vadd.f32 1.0, %v1822_v56 }
 0x32b   :  { %v1824_v49 = vpop.eup %1823 }
 0x32c   :  { %1827 = vrcp.f32 %v686_v59  ;;  %v695_v50 = vadd.f32 1.0, %v1824_v49  ;;  %v1826_v55 = vpop.eup %1825 }
 0x32d   :  { %1829 = vtanh.f32 %v698_v51  ;;  %v706_v53 = vadd.f32 1.0, %v1826_v55 }
 0x32e   :  { %1831 = vrcp.f32 %v695_v50 }
 0x32f   :  { %1833 = vrcp.f32 %v706_v53 }
 0x339   :  { %v1828_v61 = vpop.eup %1827 }
 0x33a   :  { %v1830_v63 = vpop.eup %1829 }
 0x33b   :  { %v1832_v6 = vpop.eup %1831  ;;  %v711_v58 = vmul.f32 %v1830_v63, %v1828_v61 }
 0x33c   :  { %v710_v1 = vmul.f32 %v1832_v6, %v709_v45  ;;  %v1834_v47 = vpop.eup %1833 }
 0x33e   :  { %v712_v60 = vadd.f32 %v711_v58, %v710_v1  ;;  %v2553_v1 = vld [vmem:[#allocation4 + $0x1e0] sm:$0xff]  ;;  %v2556_v58 = vld [vmem:[#allocation4 + $0x1f0] sm:$0xff] }
 0x340   :  { %1835 = vtanh.f32 %v712_v60  ;;  %715 = vst [vmem:[#allocation3] sm:$0x3] %v712_v60  ;;  %v2559_v60 = vld [vmem:[#allocation4 + $0x1c8] sm:$0xff] }
 0x347   :  { %v913_v52 = vld [vmem:[#allocation3] sm:$0x3] }
 0x34d   :  { %v1836_v56 = vpop.eup %1835 }
 0x34e   :  { %v714_v57 = vmul.f32 %v1836_v56, %v1834_v47  ;;  %v2562_v47 = vld [vmem:[#allocation4 + $0x1d8] sm:$0xff]  ;;  %v2565_v56 = vld [vmem:[#allocation4 + $0x1c0] sm:$0xff] }
 0x350   :  { %716 = vst [vmem:[#allocation2] sm:$0x3] %v714_v57  ;;  %718 = vst [vmem:[#allocation8 + $0x4] sm:$0x3] %v714_v57  ;;  %v2568_v57 = vld [vmem:[#allocation4 + $0x1d0] sm:$0xff] }
 0x357   :  { %v721_v49 = vld [vmem:[#allocation2] sm:$0x3] }
 0x358   :  { %787 = vmatmul.mubr.f32.vlgmr.msra.gmra.mxu0 %v721_v49  ;;  %858 = vmatmul.mubr.f32.vlgmr.msra.gmra.mxu1 %v721_v49  ;;  %v2571_v49 = vld [vmem:[#allocation4 + $0x1a8] sm:$0xff] }
 0x359   :  { %927 = vmatpush1.msra.mxu0 %v2081_v2  ;;  %998 = vmatpush1.msra.mxu1 %v2085_v3  ;;  %v3047_v2 = vld [vmem:[#allocation20_spill] sm:$0xff]  ;;  %v3048_v3 = vld [vmem:[#allocation21_spill] sm:$0xff] }
 0x35a   :  { %928 = vmatprep.subr.mxu0 %v2087_v4  ;;  %999 = vmatprep.subr.mxu1 %v2089_v5  ;;  %v3049_v4 = vld [vmem:[#allocation22_spill] sm:$0xff]  ;;  %v3050_v5 = vld [vmem:[#allocation23_spill] sm:$0xff] }
 0x35b   :  { %929 = vmatpush1.msra.mxu0 %v2095_v7  ;;  %1000 = vmatpush1.msra.mxu1 %v2097_v8  ;;  %v3051_v7 = vld [vmem:[#allocation24_spill] sm:$0xff]  ;;  %v3052_v8 = vld [vmem:[#allocation25_spill] sm:$0xff] }
 0x35c   :  { %930 = vmatprep.subr.mxu0 %v2099_v9  ;;  %1001 = vmatprep.subr.mxu1 %v2103_v10  ;;  %v3053_v9 = vld [vmem:[#allocation26_spill] sm:$0xff]  ;;  %v3054_v10 = vld [vmem:[#allocation27_spill] sm:$0xff] }
 0x35d   :  { %931 = vmatpush1.msra.mxu0 %v2105_v11  ;;  %1002 = vmatpush1.msra.mxu1 %v2107_v12  ;;  %v3055_v11 = vld [vmem:[#allocation28_spill] sm:$0xff]  ;;  %v3056_v12 = vld [vmem:[#allocation29_spill] sm:$0xff] }
 0x35e   :  { %932 = vmatprep.subr.mxu0 %v2111_v13  ;;  %1003 = vmatprep.subr.mxu1 %v2113_v14  ;;  %v3057_v13 = vld [vmem:[#allocation30_spill] sm:$0xff]  ;;  %v3058_v14 = vld [vmem:[#allocation31_spill] sm:$0xff] }
 0x35f   :  { %933 = vmatpush1.msra.mxu0 %v2117_v15  ;;  %1004 = vmatpush1.msra.mxu1 %v2119_v16  ;;  %v3059_v15 = vld [vmem:[#allocation32_spill] sm:$0xff]  ;;  %v3060_v16 = vld [vmem:[#allocation33_spill] sm:$0xff] }
 0x360   :  { %934 = vmatprep.subr.mxu0 %v2123_v17  ;;  %1005 = vmatprep.subr.mxu1 %v2125_v18  ;;  %v3061_v17 = vld [vmem:[#allocation34_spill] sm:$0xff]  ;;  %v3062_v18 = vld [vmem:[#allocation35_spill] sm:$0xff] }
 0x361   :  { %935 = vmatpush1.msra.mxu0 %v2129_v19  ;;  %1006 = vmatpush1.msra.mxu1 %v2131_v20  ;;  %v3063_v19 = vld [vmem:[#allocation36_spill] sm:$0xff]  ;;  %v3064_v20 = vld [vmem:[#allocation37_spill] sm:$0xff] }
 0x362   :  { %936 = vmatprep.subr.mxu0 %v2135_v21  ;;  %1007 = vmatprep.subr.mxu1 %v2137_v22  ;;  %v3065_v21 = vmov 0.0   ;;  %v3066_v22 = vld [vmem:[#allocation38_spill] sm:$0xff] }
 0x363   :  { %937 = vmatpush1.msra.mxu0 %v2141_v23  ;;  %1008 = vmatpush1.msra.mxu1 %v2143_v24  ;;  %v2545_v23 = vld [vmem:[#allocation4 + $0x1e8] sm:$0xff]  ;;  %v2548_v24 = vld [vmem:[#allocation4 + $0x1f8] sm:$0xff] }
 0x364   :  { %938 = vmatprep.subr.mxu0 %v2147_v25  ;;  %1009 = vmatprep.subr.mxu1 %v2149_v26  ;;  %3067 = vst [vmem:[#allocation19_spill] sm:$0xff] %v2545_v23  ;;  %3068 = vst [vmem:[#allocation17_spill] sm:$0xff] %v2548_v24 }
 0x365   :  { %939 = vmatpush1.msra.mxu0 %v2153_v27  ;;  %1010 = vmatpush1.msra.mxu1 %v2155_v28 }
 0x366   :  { %940 = vmatprep.subr.mxu0 %v2159_v29  ;;  %1011 = vmatprep.subr.mxu1 %v2161_v30 }
 0x367   :  { %941 = vmatpush1.msra.mxu0 %v2165_v31  ;;  %1012 = vmatpush1.msra.mxu1 %v2167_v32 }
 0x368   :  { %942 = vmatprep.subr.mxu0 %v2171_v33  ;;  %1013 = vmatprep.subr.mxu1 %v2173_v34  ;;  %v720_v33 = vld [vmem:[#allocation5 + $0x18] sm:$0xff] }
 0x369   :  { %943 = vmatpush1.msra.mxu0 %v2177_v35  ;;  %1014 = vmatpush1.msra.mxu1 %v2179_v36 }
 0x36a   :  { %944 = vmatprep.subr.mxu0 %v2183_v37  ;;  %1015 = vmatprep.subr.mxu1 %v2185_v38 }
 0x36b   :  { %945 = vmatpush1.msra.mxu0 %v2189_v39  ;;  %1016 = vmatpush1.msra.mxu1 %v2191_v40 }
 0x36c   :  { %946 = vmatprep.subr.mxu0 %v2195_v41  ;;  %1017 = vmatprep.subr.mxu1 %v2197_v42 }
 0x36d   :  { %947 = vmatpush1.msra.mxu0 %v2201_v43  ;;  %1018 = vmatpush1.msra.mxu1 %v2203_v44 }
 0x36e   :  { %948 = vmatprep.subr.mxu0 %v3003_v48  ;;  %1019 = vmatprep.subr.mxu1 %v3047_v2  ;;  %v2574_v2 = vld [vmem:[#allocation4 + $0x1b8] sm:$0xff] }
 0x36f   :  { %949 = vmatpush1.msra.mxu0 %v3048_v3  ;;  %1020 = vmatpush1.msra.mxu1 %v3049_v4  ;;  %v2577_v3 = vld [vmem:[#allocation4 + $0x1a0] sm:$0xff]  ;;  %v2580_v4 = vld [vmem:[#allocation4 + $0x1b0] sm:$0xff] }
 0x370   :  { %950 = vmatprep.subr.mxu0 %v3050_v5  ;;  %1021 = vmatprep.subr.mxu1 %v3051_v7  ;;  %v2583_v5 = vld [vmem:[#allocation4 + $0x188] sm:$0xff]  ;;  %v2586_v7 = vld [vmem:[#allocation4 + $0x198] sm:$0xff] }
 0x371   :  { %951 = vmatpush1.msra.mxu0 %v3052_v8  ;;  %1022 = vmatpush1.msra.mxu1 %v3053_v9  ;;  %v2589_v8 = vld [vmem:[#allocation4 + $0x180] sm:$0xff]  ;;  %v2592_v9 = vld [vmem:[#allocation4 + $0x190] sm:$0xff] }
 0x372   :  { %952 = vmatprep.subr.mxu0 %v3054_v10  ;;  %1023 = vmatprep.subr.mxu1 %v3055_v11  ;;  %v2595_v10 = vld [vmem:[#allocation4 + $0x168] sm:$0xff]  ;;  %v2598_v11 = vld [vmem:[#allocation4 + $0x178] sm:$0xff] }
 0x373   :  { %953 = vmatpush1.msra.mxu0 %v3056_v12  ;;  %1024 = vmatpush1.msra.mxu1 %v3057_v13  ;;  %v2601_v12 = vld [vmem:[#allocation4 + $0x160] sm:$0xff]  ;;  %v2604_v13 = vld [vmem:[#allocation4 + $0x170] sm:$0xff] }
 0x374   :  { %954 = vmatprep.subr.mxu0 %v3058_v14  ;;  %1025 = vmatprep.subr.mxu1 %v3059_v15  ;;  %v2607_v14 = vld [vmem:[#allocation4 + $0x148] sm:$0xff]  ;;  %v2610_v15 = vld [vmem:[#allocation4 + $0x158] sm:$0xff] }
 0x375   :  { %955 = vmatpush1.msra.mxu0 %v3060_v16  ;;  %1026 = vmatpush1.msra.mxu1 %v3061_v17  ;;  %v2613_v16 = vld [vmem:[#allocation4 + $0x140] sm:$0xff]  ;;  %v2616_v17 = vld [vmem:[#allocation4 + $0x150] sm:$0xff] }
 0x376   :  { %956 = vmatprep.subr.mxu0 %v3062_v18  ;;  %1027 = vmatprep.subr.mxu1 %v3063_v19  ;;  %v2619_v18 = vld [vmem:[#allocation4 + $0x128] sm:$0xff]  ;;  %v2622_v19 = vld [vmem:[#allocation4 + $0x138] sm:$0xff] }
 0x377   :  { %957 = vmatpush1.msra.mxu0 %v3064_v20  ;;  %990 = vmatprep.mubr.f32.mxu0 %v3065_v21  ;;  %v2625_v20 = vld [vmem:[#allocation4 + $0x120] sm:$0xff] }
 0x378   :  { %1028 = vmatpush1.msra.mxu1 %v3066_v22  ;;  %1061 = vmatprep.mubr.f32.mxu1 %v3065_v21  ;;  %v2628_v22 = vld [vmem:[#allocation4 + $0x130] sm:$0xff] }
 0x379   :  { %1130 = vmatprep.subr.mxu0 %v2545_v23  ;;  %1201 = vmatprep.subr.mxu1 %v2548_v24 }
 0x418   :  { %v788_v25 = vpop.f32.mrf.mxu0  ;;  %v859_v26 = vpop.f32.mrf.mxu1 }
 0x41a   :  { %v790_v27 = vpop.f32.mrf.mxu0  ;;  %v861_v28 = vpop.f32.mrf.mxu1 }
 0x41b   :  { %v868_v29 = vcombine.low %v788_v25, %v790_v27  ;;  %v869_v30 = vcombine.low %v859_v26, %v861_v28  ;;  %v2631_v25 = vld [vmem:[#allocation4 + $0x108] sm:$0xff]  ;;  %v2634_v26 = vld [vmem:[#allocation4 + $0x118] sm:$0xff]  ;;  %v2637_v27 = vld [vmem:[#allocation4 + $0x100] sm:$0xff] }
 0x41c   :  { %v2640_v28 = vld [vmem:[#allocation4 + $0x110] sm:$0xff] }
 0x41d   :  { %v876_v31 = vrot.slane %v868_v29, %v2341_v62  ;;  %v883_v32 = vrot.slane %v869_v30, %v2341_v62  ;;  %v2643_v29 = vld [vmem:[#allocation4 + $0xe8] sm:$0xff]  ;;  %v2646_v30 = vld [vmem:[#allocation4 + $0xf8] sm:$0xff] }
 0x41f   :  { %v884_v34 = vcombine.low %v876_v31, %v883_v32  ;;  %v2649_v31 = vld [vmem:[#allocation4 + $0xe0] sm:$0xff]  ;;  %v2652_v32 = vld [vmem:[#allocation4 + $0xf0] sm:$0xff] }
 0x421   :  { %v886_v35 = vadd.f32 %v884_v34, %v720_v33  ;;  %v2655_v33 = vld [vmem:[#allocation4 + $0xc8] sm:$0xff]  ;;  %v2658_v34 = vld [vmem:[#allocation4 + $0xd8] sm:$0xff] }
 0x423   :  { %v1765_v36 = vmul.f32 -1.442695, %v886_v35  ;;  %v894_v37 = vrot.slane %v886_v35, 2  ;;  %v905_v39 = vrot.slane %v886_v35, 6  ;;  %v902_v42 = vrot.slane %v886_v35, 4  ;;  %v2661_v35 = vld [vmem:[#allocation4 + $0xc0] sm:$0xff] }
 0x425   :  { %1837 = vpow2.f32 %v1765_v36  ;;  %v1766_v38 = vmul.f32 -1.442695, %v894_v37  ;;  %v1767_v40 = vmul.f32 -1.442695, %v905_v39  ;;  %v2664_v36 = vld [vmem:[#allocation4 + $0xd0] sm:$0xff]  ;;  %v2667_v37 = vld [vmem:[#allocation4 + $0xa8] sm:$0xff] }
 0x426   :  { %v2673_v39 = vld [vmem:[#allocation4 + $0xa0] sm:$0xff] }
 0x427   :  { %1839 = vpow2.f32 %v1766_v38  ;;  %v2670_v38 = vld [vmem:[#allocation4 + $0xb8] sm:$0xff] }
 0x428   :  { %1841 = vpow2.f32 %v1767_v40  ;;  %v2676_v40 = vld [vmem:[#allocation4 + $0xb0] sm:$0xff] }
 0x432   :  { %v1838_v41 = vpop.eup %1837 }
 0x433   :  { %v890_v43 = vadd.f32 1.0, %v1838_v41  ;;  %v2679_v41 = vld [vmem:[#allocation4 + $0x88] sm:$0xff] }
 0x434   :  { %v1840_v44 = vpop.eup %1839 }
 0x435   :  { %1843 = vrcp.f32 %v890_v43  ;;  %v899_v48 = vadd.f32 1.0, %v1840_v44  ;;  %v1842_v59 = vpop.eup %1841  ;;  %v2685_v43 = vld [vmem:[#allocation4 + $0x80] sm:$0xff]  ;;  %v2688_v44 = vld [vmem:[#allocation4 + $0x90] sm:$0xff] }
 0x436   :  { %1845 = vtanh.f32 %v902_v42  ;;  %v910_v54 = vadd.f32 1.0, %v1842_v59  ;;  %v2682_v42 = vld [vmem:[#allocation4 + $0x98] sm:$0xff]  ;;  %3070 = vst [vmem:[#allocation20_spill] sm:$0xff] %v2685_v43  ;;  %3071 = vst [vmem:[#allocation21_spill] sm:$0xff] %v2688_v44 }
 0x437   :  { %1847 = vrcp.f32 %v899_v48  ;;  %3069 = vst [vmem:[#allocation18_spill] sm:$0xff] %v2682_v42  ;;  %v2691_v48 = vld [vmem:[#allocation4 + $0x68] sm:$0xff]  ;;  %v2694_v59 = vld [vmem:[#allocation4 + $0x78] sm:$0xff] }
 0x438   :  { %1849 = vrcp.f32 %v910_v54  ;;  %3072 = vst [vmem:[#allocation22_spill] sm:$0xff] %v2691_v48  ;;  %3073 = vst [vmem:[#allocation23_spill] sm:$0xff] %v2694_v59  ;;  %v2706_v54 = vld [vmem:[#allocation4 + $0x58] sm:$0xff] }
 0x439   :  { %3077 = vst [vmem:[#allocation27_spill] sm:$0xff] %v2706_v54 }
 0x442   :  { %v1844_v51 = vpop.eup %1843 }
 0x443   :  { %v1846_v0 = vpop.eup %1845 }
 0x444   :  { %v1848_v46 = vpop.eup %1847  ;;  %v915_v55 = vmul.f32 %v1846_v0, %v1844_v51  ;;  %v2697_v51 = vld [vmem:[#allocation4 + $0x60] sm:$0xff]  ;;  %v2700_v0 = vld [vmem:[#allocation4 + $0x70] sm:$0xff] }
 0x445   :  { %v914_v50 = vmul.f32 %v1848_v46, %v913_v52  ;;  %v1850_v63 = vpop.eup %1849  ;;  %3074 = vst [vmem:[#allocation24_spill] sm:$0xff] %v2697_v51  ;;  %3075 = vst [vmem:[#allocation25_spill] sm:$0xff] %v2700_v0  ;;  %v2703_v46 = vld [vmem:[#allocation4 + $0x48] sm:$0xff]  ;;  %v2709_v52 = vld [vmem:[#allocation4 + $0x40] sm:$0xff] }
 0x446   :  { %3076 = vst [vmem:[#allocation26_spill] sm:$0xff] %v2703_v46  ;;  %3078 = vst [vmem:[#allocation28_spill] sm:$0xff] %v2709_v52 }
 0x447   :  { %v916_v61 = vadd.f32 %v915_v55, %v914_v50  ;;  %v2712_v50 = vld [vmem:[#allocation4 + $0x50] sm:$0xff]  ;;  %v2715_v55 = vld [vmem:[#allocation4 + $0x28] sm:$0xff] }
 0x448   :  { %3079 = vst [vmem:[#allocation29_spill] sm:$0xff] %v2712_v50  ;;  %3080 = vst [vmem:[#allocation30_spill] sm:$0xff] %v2715_v55 }
 0x449   :  { %1851 = vtanh.f32 %v916_v61  ;;  %919 = vst [vmem:[#allocation3] sm:$0x3] %v916_v61  ;;  %v2718_v61 = vld [vmem:[#allocation4 + $0x38] sm:$0xff] }
 0x44a   :  { %3081 = vst [vmem:[#allocation31_spill] sm:$0xff] %v2718_v61 }
 0x456   :  { %v1852_v6 = vpop.eup %1851 }
 0x457   :  { %v918_v53 = vmul.f32 %v1852_v6, %v1850_v63  ;;  %v2721_v63 = vld [vmem:[#allocation4 + $0x20] sm:$0xff]  ;;  %v2724_v6 = vld [vmem:[#allocation4 + $0x30] sm:$0xff] }
 0x458   :  { %3082 = vst [vmem:[#allocation32_spill] sm:$0xff] %v2721_v63  ;;  %3083 = vst [vmem:[#allocation33_spill] sm:$0xff] %v2724_v6 }
 0x459   :  { %920 = vst [vmem:[#allocation2] sm:$0x3] %v918_v53  ;;  %922 = vst [vmem:[#allocation8 + $0x6] sm:$0x3] %v918_v53  ;;  %v2727_v53 = vld [vmem:[#allocation4 + $0x8] sm:$0xff] }
 0x45a   :  { %3084 = vst [vmem:[#allocation34_spill] sm:$0xff] %v2727_v53 }
 0x460   :  { %v925_v45 = vld [vmem:[#allocation2] sm:$0x3] }
 0x461   :  { %991 = vmatmul.mubr.f32.vlgmr.msra.gmra.mxu0 %v925_v45  ;;  %1062 = vmatmul.mubr.f32.vlgmr.msra.gmra.mxu1 %v925_v45  ;;  %v2730_v45 = vld [vmem:[#allocation4 + $0x18] sm:$0xff] }
 0x462   :  { %1131 = vmatpush1.msra.mxu0 %v2553_v1  ;;  %1202 = vmatpush1.msra.mxu1 %v2556_v58  ;;  %3085 = vst [vmem:[#allocation35_spill] sm:$0xff] %v2730_v45 }
 0x463   :  { %1132 = vmatprep.subr.mxu0 %v2559_v60  ;;  %1203 = vmatprep.subr.mxu1 %v2562_v47 }
 0x464   :  { %1133 = vmatpush1.msra.mxu0 %v2565_v56  ;;  %1204 = vmatpush1.msra.mxu1 %v2568_v57 }
 0x465   :  { %1134 = vmatprep.subr.mxu0 %v2571_v49  ;;  %1205 = vmatprep.subr.mxu1 %v2574_v2 }
 0x466   :  { %1135 = vmatpush1.msra.mxu0 %v2577_v3  ;;  %1206 = vmatpush1.msra.mxu1 %v2580_v4 }
 0x467   :  { %1136 = vmatprep.subr.mxu0 %v2583_v5  ;;  %1207 = vmatprep.subr.mxu1 %v2586_v7 }
 0x468   :  { %1137 = vmatpush1.msra.mxu0 %v2589_v8  ;;  %1208 = vmatpush1.msra.mxu1 %v2592_v9 }
 0x469   :  { %1138 = vmatprep.subr.mxu0 %v2595_v10  ;;  %1209 = vmatprep.subr.mxu1 %v2598_v11 }
 0x46a   :  { %1139 = vmatpush1.msra.mxu0 %v2601_v12  ;;  %1210 = vmatpush1.msra.mxu1 %v2604_v13 }
 0x46b   :  { %1140 = vmatprep.subr.mxu0 %v2607_v14  ;;  %1211 = vmatprep.subr.mxu1 %v2610_v15 }
 0x46c   :  { %1141 = vmatpush1.msra.mxu0 %v2613_v16  ;;  %1212 = vmatpush1.msra.mxu1 %v2616_v17 }
 0x46d   :  { %1142 = vmatprep.subr.mxu0 %v2619_v18  ;;  %1213 = vmatprep.subr.mxu1 %v2622_v19 }
 0x46e   :  { %1143 = vmatpush1.msra.mxu0 %v2625_v20  ;;  %1214 = vmatpush1.msra.mxu1 %v2628_v22 }
 0x46f   :  { %1144 = vmatprep.subr.mxu0 %v2631_v25  ;;  %1215 = vmatprep.subr.mxu1 %v2634_v26 }
 0x470   :  { %1145 = vmatpush1.msra.mxu0 %v2637_v27  ;;  %1216 = vmatpush1.msra.mxu1 %v2640_v28 }
 0x471   :  { %1146 = vmatprep.subr.mxu0 %v2643_v29  ;;  %1217 = vmatprep.subr.mxu1 %v2646_v30 }
 0x472   :  { %1147 = vmatpush1.msra.mxu0 %v2649_v31  ;;  %1218 = vmatpush1.msra.mxu1 %v2652_v32 }
 0x473   :  { %1148 = vmatprep.subr.mxu0 %v2655_v33  ;;  %1219 = vmatprep.subr.mxu1 %v2658_v34 }
 0x474   :  { %1149 = vmatpush1.msra.mxu0 %v2661_v35  ;;  %1220 = vmatpush1.msra.mxu1 %v2664_v36 }
 0x475   :  { %1150 = vmatprep.subr.mxu0 %v2667_v37  ;;  %1221 = vmatprep.subr.mxu1 %v2670_v38 }
 0x476   :  { %1151 = vmatpush1.msra.mxu0 %v2673_v39  ;;  %1222 = vmatpush1.msra.mxu1 %v2676_v40 }
 0x477   :  { %1152 = vmatprep.subr.mxu0 %v2679_v41  ;;  %1223 = vmatprep.subr.mxu1 %v2682_v42 }
 0x478   :  { %1153 = vmatpush1.msra.mxu0 %v2685_v43  ;;  %1224 = vmatpush1.msra.mxu1 %v2688_v44 }
 0x479   :  { %1154 = vmatprep.subr.mxu0 %v2691_v48  ;;  %1225 = vmatprep.subr.mxu1 %v2694_v59 }
 0x47a   :  { %1155 = vmatpush1.msra.mxu0 %v2697_v51  ;;  %1226 = vmatpush1.msra.mxu1 %v2700_v0 }
 0x47b   :  { %1156 = vmatprep.subr.mxu0 %v2703_v46  ;;  %1227 = vmatprep.subr.mxu1 %v2706_v54  ;;  %v924_v46 = vld [vmem:[#allocation5 + $0x20] sm:$0xff] }
 0x47c   :  { %1157 = vmatpush1.msra.mxu0 %v2709_v52  ;;  %1228 = vmatpush1.msra.mxu1 %v2712_v50 }
 0x47d   :  { %1158 = vmatprep.subr.mxu0 %v2715_v55  ;;  %1229 = vmatprep.subr.mxu1 %v2718_v61  ;;  %v2733_v55 = vld [vmem:[#allocation4] sm:$0xff]  ;;  %v2737_v61 = vld [vmem:[#allocation4 + $0x10] sm:$0xff] }
 0x47e   :  { %1159 = vmatpush1.msra.mxu0 %v2721_v63  ;;  %1230 = vmatpush1.msra.mxu1 %v2724_v6  ;;  %3086 = vst [vmem:[#allocation36_spill] sm:$0xff] %v2733_v55  ;;  %3087 = vst [vmem:[#allocation37_spill] sm:$0xff] %v2737_v61 }
 0x47f   :  { %1160 = vmatprep.subr.mxu0 %v2727_v53  ;;  %1231 = vmatprep.subr.mxu1 %v2730_v45 }
 0x480   :  { %1161 = vmatpush1.msra.mxu0 %v2733_v55  ;;  %1194 = vmatprep.mubr.f32.mxu0 %v3065_v21 }
 0x481   :  { %1232 = vmatpush1.msra.mxu1 %v2737_v61  ;;  %1265 = vmatprep.mubr.f32.mxu1 %v3065_v21 }
 0x482   :  { %1334 = vmatprep.subr.mxu0 %v2545_v23  ;;  %1405 = vmatprep.subr.mxu1 %v2548_v24 }
 0x521   :  { %v992_v53 = vpop.f32.mrf.mxu0  ;;  %v1063_v6 = vpop.f32.mrf.mxu1 }
 0x523   :  { %v994_v63 = vpop.f32.mrf.mxu0  ;;  %v1065_v45 = vpop.f32.mrf.mxu1 }
 0x524   :  { %v1072_v50 = vcombine.low %v992_v53, %v994_v63  ;;  %v1073_v52 = vcombine.low %v1063_v6, %v1065_v45  ;;  %v3091_v6 = vld [vmem:[#allocation22_spill] sm:$0xff]  ;;  %v3092_v53 = vld [vmem:[#allocation23_spill] sm:$0xff]  ;;  %v3093_v45 = vld [vmem:[#allocation24_spill] sm:$0xff] }
 0x526   :  { %v1080_v55 = vrot.slane %v1072_v50, %v2341_v62  ;;  %v1087_v54 = vrot.slane %v1073_v52, %v2341_v62 }
 0x528   :  { %v1088_v0 = vcombine.low %v1080_v55, %v1087_v54  ;;  %v1117_v55 = vld [vmem:[#allocation3] sm:$0x3] }
 0x52a   :  { %v1090_v51 = vadd.f32 %v1088_v0, %v924_v46 }
 0x52c   :  { %v1768_v61 = vmul.f32 -1.442695, %v1090_v51  ;;  %v1098_v59 = vrot.slane %v1090_v51, 2  ;;  %v1109_v23 = vrot.slane %v1090_v51, 6  ;;  %v1106_v44 = vrot.slane %v1090_v51, 4 }
 0x52e   :  { %1853 = vpow2.f32 %v1768_v61  ;;  %v1769_v21 = vmul.f32 -1.442695, %v1098_v59  ;;  %v1770_v24 = vmul.f32 -1.442695, %v1109_v23 }
 0x530   :  { %1855 = vpow2.f32 %v1769_v21 }
 0x531   :  { %1857 = vpow2.f32 %v1770_v24 }
 0x53b   :  { %v1854_v48 = vpop.eup %1853 }
 0x53c   :  { %v1094_v43 = vadd.f32 1.0, %v1854_v48 }
 0x53d   :  { %v1856_v42 = vpop.eup %1855 }
 0x53e   :  { %1859 = vrcp.f32 %v1094_v43  ;;  %v1103_v63 = vadd.f32 1.0, %v1856_v42  ;;  %v1858_v52 = vpop.eup %1857  ;;  %v3088_v42 = vld [vmem:[#allocation18_spill] sm:$0xff]  ;;  %v3089_v43 = vld [vmem:[#allocation20_spill] sm:$0xff] }
 0x53f   :  { %1861 = vtanh.f32 %v1106_v44  ;;  %v1114_v46 = vadd.f32 1.0, %v1858_v52  ;;  %v3090_v44 = vld [vmem:[#allocation21_spill] sm:$0xff]  ;;  %v3095_v52 = vld [vmem:[#allocation26_spill] sm:$0xff] }
 0x540   :  { %1863 = vrcp.f32 %v1103_v63  ;;  %v3094_v63 = vld [vmem:[#allocation25_spill] sm:$0xff] }
 0x541   :  { %1865 = vrcp.f32 %v1114_v46  ;;  %v3099_v46 = vld [vmem:[#allocation30_spill] sm:$0xff] }
 0x54b   :  { %v1860_v50 = vpop.eup %1859 }
 0x54c   :  { %v1862_v54 = vpop.eup %1861 }
 0x54d   :  { %v1864_v0 = vpop.eup %1863  ;;  %v1119_v59 = vmul.f32 %v1862_v54, %v1860_v50  ;;  %v3096_v50 = vld [vmem:[#allocation27_spill] sm:$0xff]  ;;  %v3097_v54 = vld [vmem:[#allocation28_spill] sm:$0xff] }
 0x54e   :  { %v1118_v61 = vmul.f32 %v1864_v0, %v1117_v55  ;;  %v1866_v23 = vpop.eup %1865  ;;  %v3098_v0 = vld [vmem:[#allocation29_spill] sm:$0xff]  ;;  %v3100_v55 = vld [vmem:[#allocation31_spill] sm:$0xff] }
 0x550   :  { %v1120_v21 = vadd.f32 %v1119_v59, %v1118_v61  ;;  %v3101_v61 = vld [vmem:[#allocation32_spill] sm:$0xff]  ;;  %v3102_v59 = vld [vmem:[#allocation33_spill] sm:$0xff] }
 0x552   :  { %1867 = vtanh.f32 %v1120_v21  ;;  %1123 = vst [vmem:[#allocation3] sm:$0x3] %v1120_v21  ;;  %v3103_v21 = vld [vmem:[#allocation34_spill] sm:$0xff] }
 0x55f   :  { %v1868_v48 = vpop.eup %1867 }
 0x560   :  { %v1122_v51 = vmul.f32 %v1868_v48, %v1866_v23  ;;  %v3104_v23 = vld [vmem:[#allocation35_spill] sm:$0xff]  ;;  %v3105_v48 = vld [vmem:[#allocation36_spill] sm:$0xff] }
 0x562   :  { %1124 = vst [vmem:[#allocation2] sm:$0x3] %v1122_v51  ;;  %1126 = vst [vmem:[#allocation8 + $0x8] sm:$0x3] %v1122_v51  ;;  %v3106_v51 = vmov 0.0  }
 0x569   :  { %v1129_v24 = vld [vmem:[#allocation2] sm:$0x3] }
 0x56a   :  { %1195 = vmatmul.mubr.f32.vlgmr.msra.gmra.mxu0 %v1129_v24  ;;  %1266 = vmatmul.mubr.f32.vlgmr.msra.gmra.mxu1 %v1129_v24  ;;  %v3107_v24 = vld [vmem:[#allocation37_spill] sm:$0xff] }
 0x56b   :  { %1335 = vmatpush1.msra.mxu0 %v2553_v1  ;;  %1406 = vmatpush1.msra.mxu1 %v2556_v58 }
 0x56c   :  { %1336 = vmatprep.subr.mxu0 %v2559_v60  ;;  %1407 = vmatprep.subr.mxu1 %v2562_v47 }
 0x56d   :  { %1337 = vmatpush1.msra.mxu0 %v2565_v56  ;;  %1408 = vmatpush1.msra.mxu1 %v2568_v57 }
 0x56e   :  { %1338 = vmatprep.subr.mxu0 %v2571_v49  ;;  %1409 = vmatprep.subr.mxu1 %v2574_v2 }
 0x56f   :  { %1339 = vmatpush1.msra.mxu0 %v2577_v3  ;;  %1410 = vmatpush1.msra.mxu1 %v2580_v4 }
 0x570   :  { %1340 = vmatprep.subr.mxu0 %v2583_v5  ;;  %1411 = vmatprep.subr.mxu1 %v2586_v7 }
 0x571   :  { %1341 = vmatpush1.msra.mxu0 %v2589_v8  ;;  %1412 = vmatpush1.msra.mxu1 %v2592_v9 }
 0x572   :  { %1342 = vmatprep.subr.mxu0 %v2595_v10  ;;  %1413 = vmatprep.subr.mxu1 %v2598_v11 }
 0x573   :  { %1343 = vmatpush1.msra.mxu0 %v2601_v12  ;;  %1414 = vmatpush1.msra.mxu1 %v2604_v13 }
 0x574   :  { %1344 = vmatprep.subr.mxu0 %v2607_v14  ;;  %1415 = vmatprep.subr.mxu1 %v2610_v15 }
 0x575   :  { %1345 = vmatpush1.msra.mxu0 %v2613_v16  ;;  %1416 = vmatpush1.msra.mxu1 %v2616_v17 }
 0x576   :  { %1346 = vmatprep.subr.mxu0 %v2619_v18  ;;  %1417 = vmatprep.subr.mxu1 %v2622_v19 }
 0x577   :  { %1347 = vmatpush1.msra.mxu0 %v2625_v20  ;;  %1418 = vmatpush1.msra.mxu1 %v2628_v22 }
 0x578   :  { %1348 = vmatprep.subr.mxu0 %v2631_v25  ;;  %1419 = vmatprep.subr.mxu1 %v2634_v26 }
 0x579   :  { %1349 = vmatpush1.msra.mxu0 %v2637_v27  ;;  %1420 = vmatpush1.msra.mxu1 %v2640_v28 }
 0x57a   :  { %1350 = vmatprep.subr.mxu0 %v2643_v29  ;;  %1421 = vmatprep.subr.mxu1 %v2646_v30 }
 0x57b   :  { %1351 = vmatpush1.msra.mxu0 %v2649_v31  ;;  %1422 = vmatpush1.msra.mxu1 %v2652_v32 }
 0x57c   :  { %1352 = vmatprep.subr.mxu0 %v2655_v33  ;;  %1423 = vmatprep.subr.mxu1 %v2658_v34 }
 0x57d   :  { %1353 = vmatpush1.msra.mxu0 %v2661_v35  ;;  %1424 = vmatpush1.msra.mxu1 %v2664_v36 }
 0x57e   :  { %1354 = vmatprep.subr.mxu0 %v2667_v37  ;;  %1425 = vmatprep.subr.mxu1 %v2670_v38 }
 0x57f   :  { %1355 = vmatpush1.msra.mxu0 %v2673_v39  ;;  %1426 = vmatpush1.msra.mxu1 %v2676_v40 }
 0x580   :  { %1356 = vmatprep.subr.mxu0 %v2679_v41  ;;  %1427 = vmatprep.subr.mxu1 %v3088_v42 }
 0x581   :  { %1357 = vmatpush1.msra.mxu0 %v3089_v43  ;;  %1428 = vmatpush1.msra.mxu1 %v3090_v44 }
 0x582   :  { %1358 = vmatprep.subr.mxu0 %v3091_v6  ;;  %1429 = vmatprep.subr.mxu1 %v3092_v53 }
 0x583   :  { %1359 = vmatpush1.msra.mxu0 %v3093_v45  ;;  %1430 = vmatpush1.msra.mxu1 %v3094_v63 }
 0x584   :  { %1360 = vmatprep.subr.mxu0 %v3095_v52  ;;  %1431 = vmatprep.subr.mxu1 %v3096_v50  ;;  %v1128_v52 = vld [vmem:[#allocation5 + $0x28] sm:$0xff] }
 0x585   :  { %1361 = vmatpush1.msra.mxu0 %v3097_v54  ;;  %1432 = vmatpush1.msra.mxu1 %v3098_v0  ;;  %v3108_v0 = vld [vmem:[#allocation19_spill] sm:$0xff] }
 0x586   :  { %1362 = vmatprep.subr.mxu0 %v3099_v46  ;;  %1433 = vmatprep.subr.mxu1 %v3100_v55  ;;  %v3109_v46 = vld [vmem:[#allocation17_spill] sm:$0xff] }
 0x587   :  { %1363 = vmatpush1.msra.mxu0 %v3101_v61  ;;  %1434 = vmatpush1.msra.mxu1 %v3102_v59 }
 0x588   :  { %1364 = vmatprep.subr.mxu0 %v3103_v21  ;;  %1435 = vmatprep.subr.mxu1 %v3104_v23 }
 0x589   :  { %1365 = vmatpush1.msra.mxu0 %v3105_v48  ;;  %1398 = vmatprep.mubr.f32.mxu0 %v3106_v51 }
 0x58a   :  { %1436 = vmatpush1.msra.mxu1 %v3107_v24  ;;  %1469 = vmatprep.mubr.f32.mxu1 %v3106_v51 }
 0x58b   :  { %1538 = vmatprep.subr.mxu0 %v3108_v0  ;;  %1609 = vmatprep.subr.mxu1 %v3109_v46 }
 0x62a   :  { %v1196_v55 = vpop.f32.mrf.mxu0  ;;  %v1267_v61 = vpop.f32.mrf.mxu1 }
 0x62c   :  { %v1198_v54 = vpop.f32.mrf.mxu0  ;;  %v1269_v59 = vpop.f32.mrf.mxu1 }
 0x62d   :  { %v1276_v50 = vcombine.low %v1196_v55, %v1198_v54  ;;  %v1277_v21 = vcombine.low %v1267_v61, %v1269_v59  ;;  %v1321_v59 = vld [vmem:[#allocation3] sm:$0x3] }
 0x62f   :  { %v1284_v23 = vrot.slane %v1276_v50, %v2341_v62  ;;  %v1291_v48 = vrot.slane %v1277_v21, %v2341_v62 }
 0x631   :  { %v1292_v63 = vcombine.low %v1284_v23, %v1291_v48 }
 0x633   :  { %v1294_v45 = vadd.f32 %v1292_v63, %v1128_v52 }
 0x635   :  { %v1771_v24 = vmul.f32 -1.442695, %v1294_v45  ;;  %v1302_v53 = vrot.slane %v1294_v45, 2  ;;  %v1313_v0 = vrot.slane %v1294_v45, 6  ;;  %v1310_v44 = vrot.slane %v1294_v45, 4 }
 0x637   :  { %1869 = vpow2.f32 %v1771_v24  ;;  %v1772_v51 = vmul.f32 -1.442695, %v1302_v53  ;;  %v1773_v46 = vmul.f32 -1.442695, %v1313_v0 }
 0x639   :  { %1871 = vpow2.f32 %v1772_v51 }
 0x63a   :  { %1873 = vpow2.f32 %v1773_v46 }
 0x644   :  { %v1870_v6 = vpop.eup %1869 }
 0x645   :  { %v1298_v43 = vadd.f32 1.0, %v1870_v6 }
 0x646   :  { %v1872_v42 = vpop.eup %1871 }
 0x647   :  { %1875 = vrcp.f32 %v1298_v43  ;;  %v1307_v54 = vadd.f32 1.0, %v1872_v42  ;;  %v1874_v50 = vpop.eup %1873 }
 0x648   :  { %1877 = vtanh.f32 %v1310_v44  ;;  %v1318_v52 = vadd.f32 1.0, %v1874_v50 }
 0x649   :  { %1879 = vrcp.f32 %v1307_v54 }
 0x64a   :  { %1881 = vrcp.f32 %v1318_v52 }
 0x654   :  { %v1876_v55 = vpop.eup %1875 }
 0x655   :  { %v1878_v61 = vpop.eup %1877 }
 0x656   :  { %v1880_v63 = vpop.eup %1879  ;;  %v1323_v53 = vmul.f32 %v1878_v61, %v1876_v55 }
 0x657   :  { %v1322_v21 = vmul.f32 %v1880_v63, %v1321_v59  ;;  %v1882_v45 = vpop.eup %1881 }
 0x659   :  { %v1324_v23 = vadd.f32 %v1323_v53, %v1322_v21 }
 0x65b   :  { %1883 = vtanh.f32 %v1324_v23  ;;  %1327 = vst [vmem:[#allocation3] sm:$0x3] %v1324_v23 }
 0x662   :  { %v1525_v24 = vld [vmem:[#allocation3] sm:$0x3] }
 0x668   :  { %v1884_v6 = vpop.eup %1883 }
 0x669   :  { %v1326_v48 = vmul.f32 %v1884_v6, %v1882_v45 }
 0x66b   :  { %1328 = vst [vmem:[#allocation2] sm:$0x3] %v1326_v48  ;;  %1330 = vst [vmem:[#allocation8 + $0xa] sm:$0x3] %v1326_v48 }
 0x672   :  { %v1333_v42 = vld [vmem:[#allocation2] sm:$0x3] }
 0x673   :  { %1399 = vmatmul.mubr.f32.vlgmr.msra.gmra.mxu0 %v1333_v42  ;;  %1470 = vmatmul.mubr.f32.vlgmr.msra.gmra.mxu1 %v1333_v42  ;;  %v1536_v42 = vld [vmem:[#allocation5 + $0x38] sm:$0xff] }
 0x674   :  { %1539 = vmatpush1.msra.mxu0 %v2553_v1  ;;  %1610 = vmatpush1.msra.mxu1 %v2556_v58  ;;  %v3110_v1 = vld [vmem:[#allocation18_spill] sm:$0xff]  ;;  %v3111_v58 = vld [vmem:[#allocation20_spill] sm:$0xff] }
 0x675   :  { %1540 = vmatprep.subr.mxu0 %v2559_v60  ;;  %1611 = vmatprep.subr.mxu1 %v2562_v47  ;;  %v3112_v60 = vld [vmem:[#allocation21_spill] sm:$0xff]  ;;  %v3113_v47 = vld [vmem:[#allocation22_spill] sm:$0xff] }
 0x676   :  { %1541 = vmatpush1.msra.mxu0 %v2565_v56  ;;  %1612 = vmatpush1.msra.mxu1 %v2568_v57  ;;  %v3114_v56 = vld [vmem:[#allocation23_spill] sm:$0xff]  ;;  %v3115_v57 = vld [vmem:[#allocation24_spill] sm:$0xff] }
 0x677   :  { %1542 = vmatprep.subr.mxu0 %v2571_v49  ;;  %1613 = vmatprep.subr.mxu1 %v2574_v2  ;;  %v3116_v49 = vld [vmem:[#allocation25_spill] sm:$0xff]  ;;  %v3117_v2 = vld [vmem:[#allocation26_spill] sm:$0xff] }
 0x678   :  { %1543 = vmatpush1.msra.mxu0 %v2577_v3  ;;  %1614 = vmatpush1.msra.mxu1 %v2580_v4  ;;  %v3118_v3 = vld [vmem:[#allocation27_spill] sm:$0xff]  ;;  %v3119_v4 = vld [vmem:[#allocation28_spill] sm:$0xff] }
 0x679   :  { %1544 = vmatprep.subr.mxu0 %v2583_v5  ;;  %1615 = vmatprep.subr.mxu1 %v2586_v7  ;;  %v3120_v5 = vld [vmem:[#allocation29_spill] sm:$0xff]  ;;  %v3121_v7 = vld [vmem:[#allocation30_spill] sm:$0xff] }
 0x67a   :  { %1545 = vmatpush1.msra.mxu0 %v2589_v8  ;;  %1616 = vmatpush1.msra.mxu1 %v2592_v9  ;;  %v3122_v8 = vld [vmem:[#allocation31_spill] sm:$0xff]  ;;  %v3123_v9 = vld [vmem:[#allocation32_spill] sm:$0xff] }
 0x67b   :  { %1546 = vmatprep.subr.mxu0 %v2595_v10  ;;  %1617 = vmatprep.subr.mxu1 %v2598_v11  ;;  %v3124_v10 = vld [vmem:[#allocation33_spill] sm:$0xff]  ;;  %v3125_v11 = vld [vmem:[#allocation34_spill] sm:$0xff] }
 0x67c   :  { %1547 = vmatpush1.msra.mxu0 %v2601_v12  ;;  %1618 = vmatpush1.msra.mxu1 %v2604_v13  ;;  %v3126_v12 = vld [vmem:[#allocation35_spill] sm:$0xff]  ;;  %v3127_v13 = vld [vmem:[#allocation36_spill] sm:$0xff] }
 0x67d   :  { %1548 = vmatprep.subr.mxu0 %v2607_v14  ;;  %1619 = vmatprep.subr.mxu1 %v2610_v15  ;;  %v3128_v14 = vmov 0.0   ;;  %v3129_v15 = vld [vmem:[#allocation37_spill] sm:$0xff] }
 0x67e   :  { %1549 = vmatpush1.msra.mxu0 %v2613_v16  ;;  %1620 = vmatpush1.msra.mxu1 %v2616_v17 }
 0x67f   :  { %1550 = vmatprep.subr.mxu0 %v2619_v18  ;;  %1621 = vmatprep.subr.mxu1 %v2622_v19 }
 0x680   :  { %1551 = vmatpush1.msra.mxu0 %v2625_v20  ;;  %1622 = vmatpush1.msra.mxu1 %v2628_v22 }
 0x681   :  { %1552 = vmatprep.subr.mxu0 %v2631_v25  ;;  %1623 = vmatprep.subr.mxu1 %v2634_v26 }
 0x682   :  { %1553 = vmatpush1.msra.mxu0 %v2637_v27  ;;  %1624 = vmatpush1.msra.mxu1 %v2640_v28  ;;  %v1332_v27 = vld [vmem:[#allocation5 + $0x30] sm:$0xff] }
 0x683   :  { %1554 = vmatprep.subr.mxu0 %v2643_v29  ;;  %1625 = vmatprep.subr.mxu1 %v2646_v30 }
 0x684   :  { %1555 = vmatpush1.msra.mxu0 %v2649_v31  ;;  %1626 = vmatpush1.msra.mxu1 %v2652_v32 }
 0x685   :  { %1556 = vmatprep.subr.mxu0 %v2655_v33  ;;  %1627 = vmatprep.subr.mxu1 %v2658_v34 }
 0x686   :  { %1557 = vmatpush1.msra.mxu0 %v2661_v35  ;;  %1628 = vmatpush1.msra.mxu1 %v2664_v36 }
 0x687   :  { %1558 = vmatprep.subr.mxu0 %v2667_v37  ;;  %1629 = vmatprep.subr.mxu1 %v2670_v38 }
 0x688   :  { %1559 = vmatpush1.msra.mxu0 %v2673_v39  ;;  %1630 = vmatpush1.msra.mxu1 %v2676_v40 }
 0x689   :  { %1560 = vmatprep.subr.mxu0 %v2679_v41  ;;  %1631 = vmatprep.subr.mxu1 %v3110_v1 }
 0x68a   :  { %1561 = vmatpush1.msra.mxu0 %v3111_v58  ;;  %1632 = vmatpush1.msra.mxu1 %v3112_v60 }
 0x68b   :  { %1562 = vmatprep.subr.mxu0 %v3113_v47  ;;  %1633 = vmatprep.subr.mxu1 %v3114_v56 }
 0x68c   :  { %1563 = vmatpush1.msra.mxu0 %v3115_v57  ;;  %1634 = vmatpush1.msra.mxu1 %v3116_v49 }
 0x68d   :  { %1564 = vmatprep.subr.mxu0 %v3117_v2  ;;  %1635 = vmatprep.subr.mxu1 %v3118_v3 }
 0x68e   :  { %1565 = vmatpush1.msra.mxu0 %v3119_v4  ;;  %1636 = vmatpush1.msra.mxu1 %v3120_v5 }
 0x68f   :  { %1566 = vmatprep.subr.mxu0 %v3121_v7  ;;  %1637 = vmatprep.subr.mxu1 %v3122_v8 }
 0x690   :  { %1567 = vmatpush1.msra.mxu0 %v3123_v9  ;;  %1638 = vmatpush1.msra.mxu1 %v3124_v10 }
 0x691   :  { %1568 = vmatprep.subr.mxu0 %v3125_v11  ;;  %1639 = vmatprep.subr.mxu1 %v3126_v12 }
 0x692   :  { %1569 = vmatpush1.msra.mxu0 %v3127_v13  ;;  %1602 = vmatprep.mubr.f32.mxu0 %v3128_v14 }
 0x693   :  { %1640 = vmatpush1.msra.mxu1 %v3129_v15  ;;  %1673 = vmatprep.mubr.f32.mxu1 %v3128_v14 }
 0x733   :  { %v1400_v16 = vpop.f32.mrf.mxu0  ;;  %v1471_v17 = vpop.f32.mrf.mxu1 }
 0x735   :  { %v1402_v18 = vpop.f32.mrf.mxu0  ;;  %v1473_v19 = vpop.f32.mrf.mxu1 }
 0x736   :  { %v1480_v20 = vcombine.low %v1400_v16, %v1402_v18  ;;  %v1481_v22 = vcombine.low %v1471_v17, %v1473_v19 }
 0x738   :  { %v1488_v25 = vrot.slane %v1480_v20, %v2341_v62  ;;  %v1495_v26 = vrot.slane %v1481_v22, %v2341_v62 }
 0x73a   :  { %v1496_v28 = vcombine.low %v1488_v25, %v1495_v26 }
 0x73c   :  { %v1498_v29 = vadd.f32 %v1496_v28, %v1332_v27 }
 0x73e   :  { %v1774_v30 = vmul.f32 -1.442695, %v1498_v29  ;;  %v1506_v31 = vrot.slane %v1498_v29, 2  ;;  %v1517_v33 = vrot.slane %v1498_v29, 6  ;;  %v1514_v36 = vrot.slane %v1498_v29, 4 }
 0x740   :  { %1885 = vpow2.f32 %v1774_v30  ;;  %v1775_v32 = vmul.f32 -1.442695, %v1506_v31  ;;  %v1776_v34 = vmul.f32 -1.442695, %v1517_v33 }
 0x742   :  { %1887 = vpow2.f32 %v1775_v32 }
 0x743   :  { %1889 = vpow2.f32 %v1776_v34 }
 0x74d   :  { %v1886_v35 = vpop.eup %1885 }
 0x74e   :  { %v1502_v37 = vadd.f32 1.0, %v1886_v35 }
 0x74f   :  { %v1888_v38 = vpop.eup %1887 }
 0x750   :  { %1891 = vrcp.f32 %v1502_v37  ;;  %v1511_v39 = vadd.f32 1.0, %v1888_v38  ;;  %v1890_v40 = vpop.eup %1889 }
 0x751   :  { %1893 = vtanh.f32 %v1514_v36  ;;  %v1522_v51 = vadd.f32 1.0, %v1890_v40 }
 0x752   :  { %1895 = vrcp.f32 %v1511_v39 }
 0x753   :  { %1897 = vrcp.f32 %v1522_v51 }
 0x75d   :  { %v1892_v41 = vpop.eup %1891 }
 0x75e   :  { %v1894_v43 = vpop.eup %1893 }
 0x75f   :  { %v1896_v44 = vpop.eup %1895  ;;  %v1527_v46 = vmul.f32 %v1894_v43, %v1892_v41 }
 0x760   :  { %v1526_v0 = vmul.f32 %v1896_v44, %v1525_v24  ;;  %v1898_v50 = vpop.eup %1897 }
 0x762   :  { %v1528_v54 = vadd.f32 %v1527_v46, %v1526_v0 }
 0x764   :  { %1899 = vtanh.f32 %v1528_v54  ;;  %1531 = vst [vmem:[#allocation3] sm:$0x3] %v1528_v54 }
 0x76b   :  { %v1729_v12 = vld [vmem:[#allocation3] sm:$0x3] }
 0x771   :  { %v1900_v55 = vpop.eup %1899 }
 0x772   :  { %v1530_v61 = vmul.f32 %v1900_v55, %v1898_v50 }
 0x774   :  { %1532 = vst [vmem:[#allocation2] sm:$0x3] %v1530_v61  ;;  %1534 = vst [vmem:[#allocation8 + $0xc] sm:$0x3] %v1530_v61 }
 0x77b   :  { %v1537_v63 = vld [vmem:[#allocation2] sm:$0x3] }
 0x77c   :  { %1603 = vmatmul.mubr.f32.vlgmr.msra.gmra.mxu0 %v1537_v63  ;;  %1674 = vmatmul.mubr.f32.vlgmr.msra.gmra.mxu1 %v1537_v63 }
 0x83c   :  { %v1604_v52 = vpop.f32.mrf.mxu0  ;;  %v1675_v59 = vpop.f32.mrf.mxu1 }
 0x83e   :  { %v1606_v21 = vpop.f32.mrf.mxu0  ;;  %v1677_v53 = vpop.f32.mrf.mxu1 }
 0x83f   :  { %v1684_v23 = vcombine.low %v1604_v52, %v1606_v21  ;;  %v1685_v45 = vcombine.low %v1675_v59, %v1677_v53 }
 0x841   :  { %v1692_v6 = vrot.slane %v1684_v23, %v2341_v62  ;;  %v1699_v48 = vrot.slane %v1685_v45, %v2341_v62 }
 0x843   :  { %v1700_v1 = vcombine.low %v1692_v6, %v1699_v48 }
 0x845   :  { %v1702_v58 = vadd.f32 %v1700_v1, %v1536_v42 }
 0x847   :  { %v1777_v60 = vmul.f32 -1.442695, %v1702_v58  ;;  %v1710_v47 = vrot.slane %v1702_v58, 2  ;;  %v1721_v57 = vrot.slane %v1702_v58, 6  ;;  %v1718_v3 = vrot.slane %v1702_v58, 4 }
 0x849   :  { %1901 = vpow2.f32 %v1777_v60  ;;  %v1778_v56 = vmul.f32 -1.442695, %v1710_v47  ;;  %v1779_v49 = vmul.f32 -1.442695, %v1721_v57 }
 0x84b   :  { %1903 = vpow2.f32 %v1778_v56 }
 0x84c   :  { %1905 = vpow2.f32 %v1779_v49 }
 0x856   :  { %v1902_v2 = vpop.eup %1901 }
 0x857   :  { %v1706_v4 = vadd.f32 1.0, %v1902_v2 }
 0x858   :  { %v1904_v5 = vpop.eup %1903 }
 0x859   :  { %1907 = vrcp.f32 %v1706_v4  ;;  %v1715_v7 = vadd.f32 1.0, %v1904_v5  ;;  %v1906_v62 = vpop.eup %1905 }
 0x85a   :  { %1909 = vtanh.f32 %v1718_v3  ;;  %v1726_v11 = vadd.f32 1.0, %v1906_v62 }
 0x85b   :  { %1911 = vrcp.f32 %v1715_v7 }
 0x85c   :  { %1913 = vrcp.f32 %v1726_v11 }
 0x866   :  { %v1908_v8 = vpop.eup %1907 }
 0x867   :  { %v1910_v9 = vpop.eup %1909 }
 0x868   :  { %v1912_v10 = vpop.eup %1911  ;;  %v1731_v14 = vmul.f32 %v1910_v9, %v1908_v8 }
 0x869   :  { %v1730_v13 = vmul.f32 %v1912_v10, %v1729_v12  ;;  %v1914_v16 = vpop.eup %1913 }
 0x86b   :  { %v1732_v15 = vadd.f32 %v1731_v14, %v1730_v13 }
 0x86d   :  { %1915 = vtanh.f32 %v1732_v15  ;;  %1735 = vst [vmem:[#allocation3] sm:$0x3] %v1732_v15 }
 0x87a   :  { %v1916_v17 = vpop.eup %1915 }
 0x87b   :  { %v1734_v18 = vmul.f32 %v1916_v17, %v1914_v16 }
 0x87d   :  { %1736 = vst [vmem:[#allocation2] sm:$0x3] %v1734_v18  ;;  %1738 = vst [vmem:[#allocation8 + $0xe] sm:$0x3] %v1734_v18 }
 0x87e   :  { %2032 = shalt.err (!%p2029_p0)
}
 0x87f   :  { %s2054_s22 = smov 32   ;;  %s2055_s23 = smov 2  }
 0x880   :  { %1750 = dma.vmem_to_hbm [thread:$0]  %s1745_s1, 256, %s2886_s2, [#allocation7], %s2054_s22, %s2054_s22, %s2055_s23  }
 0x881   :  { %2045 = dma.done.wait [#allocation7], 256  }
 0x882   :  { %2046 = vsyncadd [#allocation7], 4294967040 }
 0x883   :  { %1754 = vsyncpa [#allocation6], 1 }
 0x884   :  { %1755 = vsyncpa [#allocation7], 1 }

</bundles_post_ra>
